<compile_context>
chip_gen: v5e
topology: v5e:2x2
jax: 0.10.0
libtpu: 0.0.40
codegen_flags: <defaults>
</compile_context>

<pallas_src>
import jax
import jax.numpy as jnp
from jax import lax
from jax.experimental import pallas as pl
from jax.experimental.pallas import tpu as pltpu

# output-lane slots for the six partial sums
_PITCH_SE, _ENERGY_SE, _DUR_SE, _MEL_AE, _POST_AE, _CE_SUM = range(6)
_OUT_SUB, _OUT_LANES = 8, 128


def _vmem_capacity_bytes():
    try:
        return int(pltpu.get_tpu_info().vmem_capacity_bytes)
    except Exception:
        return 64 * 2 ** 20          # conservative (v7x-sized) fallback


def _num_tensorcores():
    # TODO(synk): confirm the leading "parallel" axis really shards across both
    # TensorCores on v7x; if not, switch that axis to pltpu.CORE_PARALLEL.
    try:
        kind = (jax.devices()[0].device_kind or "").lower()
        if "v7" in kind:
            return 2
    except Exception:
        pass
    return 1


def _build_kernel(*, n_inner, tile_c, compute_ce, pitch_phoneme, energy_phoneme,
                  need_frame_mask):
    """Build the reduction kernel for a static configuration."""

    def kernel(*refs):
        it = iter(refs)
        mel_t_ref = next(it)                  # (B, tile_c) lane-dense mel target
        mel_p_ref = next(it)
        post_p_ref = next(it)
        valid_elems_ref = next(it)            # (B, 1) int32: mel_len * n_mels
        pitch_p_ref = next(it)
        pitch_t_ref = next(it)
        energy_p_ref = next(it)
        energy_t_ref = next(it)
        logdur_p_ref = next(it)
        dur_t_ref = next(it)
        src_valid_ref = next(it)              # (B, T_src) f32, 1.0 == valid
        frame_valid_ref = next(it) if need_frame_mask else None
        phon_logits_ref = next(it) if compute_ce else None
        phon_tgt_ref = next(it) if compute_ce else None
        out_ref = next(it)                    # (1, 8, 128) f32 resident accumulator

        c = pl.program_id(0)                  # parallel split index
        t = pl.program_id(1)                  # tile index within the split
        lane = lax.broadcasted_iota(jnp.int32, (1, _OUT_SUB, _OUT_LANES), 2)

        def packed(idx, val):
            return jnp.where(lane == idx, val, 0.0)

        # ---- init the resident output block at the start of each split ----
        @pl.when(t == 0)
        def _init():
            out_ref[...] = jnp.zeros((1, _OUT_SUB, _OUT_LANES), jnp.float32)

        # ---- small per-token tracks: once, on the first step of split 0 ----
        @pl.when(jnp.logical_and(c == 0, t == 0))
        def _tracks():
            src_valid = src_valid_ref[...]

            # log-duration MSE sum (always src-masked)
            ld_t = jnp.log(dur_t_ref[...].astype(jnp.float32) + 1.0)
            dd = logdur_p_ref[...].astype(jnp.float32) - ld_t
            dur_se = jnp.sum(dd * dd * src_valid)

            # pitch MSE sum
            p_valid = src_valid if pitch_phoneme else frame_valid_ref[...]
            pd = (pitch_p_ref[...].astype(jnp.float32)
                  - pitch_t_ref[...].astype(jnp.float32))
            pitch_se = jnp.sum(pd * pd * p_valid)

            # energy MSE sum
            e_valid = src_valid if energy_phoneme else frame_valid_ref[...]
            ed = (energy_p_ref[...].astype(jnp.float32)
                  - energy_t_ref[...].astype(jnp.float32))
            energy_se = jnp.sum(ed * ed * e_valid)

            vec = (packed(_DUR_SE, dur_se) + packed(_PITCH_SE, pitch_se)
                   + packed(_ENERGY_SE, energy_se))

            if compute_ce:
                # cross-entropy over the class axis of the native (B, C, T_src)
                # layout (no glue-side transpose); ignore_index == -1; per-token
                # loss is where-masked before summation (NaN-safe for pads).
                logits = phon_logits_ref[...].astype(jnp.float32)
                tgt = phon_tgt_ref[...]
                m = jnp.max(logits, axis=1, keepdims=True)
                lse = jnp.log(jnp.sum(jnp.exp(logits - m), axis=1)) + m[:, 0, :]
                cls = lax.broadcasted_iota(jnp.int32, logits.shape, 1)
                tgt_logit = jnp.sum(
                    jnp.where(cls == tgt[:, None, :], logits, 0.0), axis=1)
                ce = jnp.sum(jnp.where(tgt >= 0, lse - tgt_logit, 0.0))
                vec = vec + packed(_CE_SUM, ce)

            out_ref[...] += vec

        # ---- lane-dense mel / postnet-mel MAE partial sums (every tile) ----
        mel_t = mel_t_ref[...].astype(jnp.float32)
        mel_p = mel_p_ref[...].astype(jnp.float32)
        post_p = post_p_ref[...].astype(jnp.float32)
        b = mel_t.shape[0]
        col0 = (c * n_inner + t) * tile_c
        cols = lax.broadcasted_iota(jnp.int32, (b, tile_c), 1) + col0
        # prefix-length per-element validity; also neutralises the unspecified
        # padding of the partial edge tile (keep the select form: NaN/Inf-safe).
        valid = cols < valid_elems_ref[...]
        mel_ae = jnp.sum(jnp.where(valid, jnp.abs(mel_p - mel_t), 0.0))
        post_ae = jnp.sum(jnp.where(valid, jnp.abs(post_p - mel_t), 0.0))
        out_ref[...] += packed(_MEL_AE, mel_ae) + packed(_POST_AE, post_ae)

    return kernel


def _plan_tiles(B, N, itemsize, n_mels, mel_tile_frames):
    """Pick a lane-dense column tile and an exact (n_split, n_inner) grid."""
    vmem_cap = _vmem_capacity_bytes()
    # per-column footprint: 3 tiled streams double-buffered + ~8 f32 temporaries
    per_col = B * (3 * 2 * itemsize + 8 * 4)
    budget = min(16 * 2 ** 20, (vmem_cap * 2) // 5)
    tile_c = (max(budget // max(per_col, 1), 128) // 128) * 128
    tile_c = min(tile_c, 131072)
    if mel_tile_frames is not None:
        tile_c = max(128, (int(mel_tile_frames) * n_mels // 128) * 128)
        tile_c = min(tile_c, 131072)
    if tile_c >= N:
        tile_c = int(N)                       # whole axis in one (full-dim) block
    n_total = -(-N // tile_c)
    n_split = 2 if (_num_tensorcores() >= 2 and n_total >= 2
                    and n_total % 2 == 0) else 1
    n_inner = n_total // n_split
    return tile_c, n_split, n_inner, vmem_cap


def _loss_sums(mel_t_flat, mel_p_flat, post_p_flat, valid_elems,
               pitch_p, pitch_t, energy_p, energy_t, logdur_p, dur_t,
               src_valid, frame_valid, phon_logits, phon_tgt, *,
               pitch_phoneme, energy_phoneme, compute_ce, n_mels, mel_tile=None):
    B, N = mel_t_flat.shape
    itemsize = jnp.dtype(mel_t_flat.dtype).itemsize
    tile_c, n_split, n_inner, vmem_cap = _plan_tiles(B, N, itemsize, n_mels, mel_tile)
    need_frame_mask = frame_valid is not None

    def stream_map(c, t):
        return (0, c * n_inner + t)           # exact: n_split * n_inner == n_total

    def full_spec(x):
        nd = x.ndim

        def imap(c, t):
            return (0,) * nd

        return pl.BlockSpec(x.shape, imap)

    tiled_args = [mel_t_flat, mel_p_flat, post_p_flat]
    small_args = [valid_elems, pitch_p, pitch_t, energy_p, energy_t, logdur_p,
                  dur_t, src_valid]
    if need_frame_mask:
        small_args.append(frame_valid)
    if compute_ce:
        small_args += [phon_logits, phon_tgt]

    in_specs = [pl.BlockSpec((B, tile_c), stream_map) for _ in range(3)]
    in_specs += [full_spec(a) for a in small_args]

    resid_raw = sum(int(a.size) * jnp.dtype(a.dtype).itemsize for a in small_args)
    stream_bytes = 3 * 2 * B * tile_c * itemsize          # double-buffered streams
    temp_bytes = 8 * B * tile_c * 4                        # f32 temporaries headroom
    vmem_need = stream_bytes + temp_bytes + 2 * resid_raw + 4 * 2 ** 20
    vmem_limit = int(min(max(vmem_need, 16 * 2 ** 20), (vmem_cap * 3) // 4))

    cost = pl.CostEstimate(
        flops=int(8 * B * N + 16 * resid_raw),
        transcendentals=int((phon_logits.size if compute_ce else 0) + dur_t.size),
        bytes_accessed=int(3 * B * N * itemsize + resid_raw
                           + n_split * _OUT_SUB * _OUT_LANES * 4))

    kernel = _build_kernel(n_inner=n_inner, tile_c=tile_c, compute_ce=compute_ce,
                           pitch_phoneme=pitch_phoneme,
                           energy_phoneme=energy_phoneme,
                           need_frame_mask=need_frame_mask)

    out = pl.pallas_call(
        kernel,
        out_shape=jax.ShapeDtypeStruct((n_split, _OUT_SUB, _OUT_LANES), jnp.float32),
        grid_spec=pltpu.PrefetchScalarGridSpec(
            num_scalar_prefetch=0,
            grid=(n_split, n_inner),
            in_specs=in_specs,
            out_specs=pl.BlockSpec((1, _OUT_SUB, _OUT_LANES), lambda c, t: (c, 0, 0)),
        ),
        compiler_params=pltpu.CompilerParams(
            dimension_semantics=("parallel", "arbitrary"),
            vmem_limit_bytes=vmem_limit,
        ),
        cost_estimate=cost,
    )(*tiled_args, *small_args)

    # sum the per-split rows; the first six lanes hold the partial sums
    return jnp.sum(out[:, 0, :], axis=0)


def fastspeech2_loss(inputs, predictions,
                     pitch_feature_level="phoneme_level",
                     energy_feature_level="phoneme_level",
                     compute_phon_prediction=True,
                     no_spectro=False,
                     mel_tile=None):
    (mel_targets, _, _, pitch_targets, energy_targets,
     duration_targets, phon_align_targets) = inputs[6:]
    (mel_predictions, postnet_mel_predictions, pitch_predictions,
     energy_predictions, log_duration_predictions, _, src_masks,
     mel_masks, _, _, phon_align_predictions, src_masks_noSpectro) = predictions

    T_mel = mel_masks.shape[1]
    mel_targets = mel_targets[:, :T_mel, :]
    B, _, n_mels = mel_targets.shape
    N = T_mel * n_mels

    # lane-dense flat views (free re-layout of contiguous (B, T_mel, n_mels))
    mel_t_flat = mel_targets.reshape(B, N)
    mel_p_flat = mel_predictions[:, :T_mel, :].reshape(B, N)
    post_p_flat = postnet_mel_predictions[:, :T_mel, :].reshape(B, N)

    # masks enter with PyTorch's "True == padded" convention
    mel_valid_bool = jnp.logical_not(mel_masks)
    src_valid_bool = jnp.logical_not(src_masks_noSpectro)
    # TODO(synk): the lane-dense validity threshold assumes prefix (length) mel
    # masks, which is what FastSpeech2's get_mask_from_lengths produces.
    mel_valid_frames = jnp.sum(mel_valid_bool, axis=1, dtype=jnp.int32)
    valid_elems = (mel_valid_frames * n_mels).reshape(B, 1).astype(jnp.int32)
    src_valid = src_valid_bool.astype(jnp.float32)

    pitch_phoneme = pitch_feature_level == "phoneme_level"
    energy_phoneme = energy_feature_level == "phoneme_level"
    need_frame_mask = (not pitch_phoneme) or (not energy_phoneme)
    frame_valid = mel_valid_bool.astype(jnp.float32) if need_frame_mask else None

    # cheap counts on tiny mask arrays (denominators stay in glue)
    src_n = jnp.sum(src_valid)
    mel_elem_n = jnp.sum(mel_valid_frames).astype(jnp.float32) * n_mels
    frame_n = jnp.sum(mel_valid_bool).astype(jnp.float32)
    pitch_n = src_n if pitch_phoneme else frame_n
    energy_n = src_n if energy_phoneme else frame_n

    if compute_phon_prediction:
        phon_tgt = phon_align_targets.astype(jnp.int32)
        ce_n = jnp.sum((phon_tgt >= 0).astype(jnp.float32))
    else:
        phon_tgt = None
        ce_n = jnp.float32(1.0)

    sums = _loss_sums(
        mel_t_flat, mel_p_flat, post_p_flat, valid_elems,
        pitch_predictions, pitch_targets, energy_predictions, energy_targets,
        log_duration_predictions, duration_targets, src_valid, frame_valid,
        phon_align_predictions, phon_tgt,
        pitch_phoneme=pitch_phoneme, energy_phoneme=energy_phoneme,
        compute_ce=bool(compute_phon_prediction), n_mels=n_mels,
        mel_tile=mel_tile)

    def safe_div(a, b):
        return a / jnp.maximum(b, 1.0)

    pitch_loss = safe_div(sums[_PITCH_SE], pitch_n)
    energy_loss = safe_div(sums[_ENERGY_SE], energy_n)
    duration_loss = safe_div(sums[_DUR_SE], src_n)
    mel_loss = safe_div(sums[_MEL_AE], mel_elem_n)
    postnet_mel_loss = safe_div(sums[_POST_AE], mel_elem_n)

    # torch guard `if no_spectro or not torch.any(src_masks_noSpectro)` runs AFTER
    # the `~` inversion, i.e. "no valid source token" => zero the spectro losses.
    has_valid = jnp.logical_and(jnp.logical_not(jnp.asarray(no_spectro)), src_n > 0)
    zero = jnp.float32(0.0)
    mel_loss = jnp.where(has_valid, mel_loss, zero)
    postnet_mel_loss = jnp.where(has_valid, postnet_mel_loss, zero)
    pitch_loss = jnp.where(has_valid, pitch_loss, zero)
    energy_loss = jnp.where(has_valid, energy_loss, zero)
    duration_loss = jnp.where(has_valid, duration_loss, zero)

    if compute_phon_prediction:
        phon_align_loss = safe_div(sums[_CE_SUM], ce_n)
    else:
        phon_align_loss = zero

    total_loss = (mel_loss + postnet_mel_loss + duration_loss
                  + pitch_loss + energy_loss + phon_align_loss)
    return (total_loss, mel_loss, postnet_mel_loss, pitch_loss,
            energy_loss, duration_loss, phon_align_loss)


if __name__ == "__main__":
    key = jax.random.PRNGKey(0)
    ks = jax.random.split(key, 12)
    B, T_src, T_mel, n_mels, C = 2, 8, 300, 32, 16

    src_lens = jnp.array([8, 5])
    mel_lens = jnp.array([300, 211])
    src_masks = jnp.arange(T_src)[None, :] >= src_lens[:, None]      # True = padded
    mel_masks = jnp.arange(T_mel)[None, :] >= mel_lens[:, None]      # True = padded
    src_masks_noSpectro = src_masks

    mel_targets = jax.random.normal(ks[0], (B, T_mel, n_mels), jnp.float32)
    pitch_targets = jax.random.normal(ks[1], (B, T_src), jnp.float32)
    energy_targets = jax.random.normal(ks[2], (B, T_src), jnp.float32)
    duration_targets = jax.random.randint(ks[3], (B, T_src), 1, 8).astype(jnp.float32)
    phon_align_targets = jax.random.randint(ks[4], (B, T_src), 0, C)
    phon_align_targets = jnp.where(src_masks, -1, phon_align_targets).astype(jnp.int32)

    mel_predictions = jax.random.normal(ks[5], (B, T_mel, n_mels), jnp.float32)
    postnet_mel_predictions = jax.random.normal(ks[6], (B, T_mel, n_mels), jnp.float32)
    pitch_predictions = jax.random.normal(ks[7], (B, T_src), jnp.float32)
    energy_predictions = jax.random.normal(ks[8], (B, T_src), jnp.float32)
    log_duration_predictions = jax.random.normal(ks[9], (B, T_src), jnp.float32)
    phon_align_predictions = jax.random.normal(ks[10], (B, C, T_src), jnp.float32)

    inputs = (None,) * 6 + (mel_targets, None, None, pitch_targets,
                            energy_targets, duration_targets, phon_align_targets)
    predictions = (mel_predictions, postnet_mel_predictions, pitch_predictions,
                   energy_predictions, log_duration_predictions, None,
                   src_masks, mel_masks, None, None,
                   phon_align_predictions, src_masks_noSpectro)

    # multi-tile path (128-frame tiles -> several column tiles + partial edge tile)
    out_tiled = jax.block_until_ready(fastspeech2_loss(inputs, predictions, mel_tile=128))
    # auto-tile path (whole flattened mel axis in one block at these shapes)
    out_auto = jax.block_until_ready(fastspeech2_loss(inputs, predictions))

    # ---- pure-JAX reference check ----
    src_valid = (~src_masks_noSpectro).astype(jnp.float32)
    mel_valid = (~mel_masks).astype(jnp.float32)

    def masked_mse(p, t, m):
        return jnp.sum((p - t) ** 2 * m) / jnp.sum(m)

    pitch_ref = masked_mse(pitch_predictions, pitch_targets, src_valid)
    energy_ref = masked_mse(energy_predictions, energy_targets, src_valid)
    dur_ref = masked_mse(log_duration_predictions, jnp.log(duration_targets + 1.0), src_valid)
    m3 = mel_valid[:, :, None]
    denom = jnp.sum(mel_valid) * n_mels
    mel_ref = jnp.sum(jnp.abs(mel_predictions - mel_targets) * m3) / denom
    post_ref = jnp.sum(jnp.abs(postnet_mel_predictions - mel_targets) * m3) / denom
    logp = jax.nn.log_softmax(phon_align_predictions, axis=1)
    ce_valid = (phon_align_targets >= 0)
    tgt_c = jnp.where(ce_valid, phon_align_targets, 0)
    picked = jnp.take_along_axis(logp, tgt_c[:, None, :], axis=1)[:, 0, :]
    ce_ref = -jnp.sum(picked * ce_valid) / jnp.sum(ce_valid)
    total_ref = mel_ref + post_ref + dur_ref + pitch_ref + energy_ref + ce_ref
    ref = (total_ref, mel_ref, post_ref, pitch_ref, energy_ref, dur_ref, ce_ref)

    for out in (out_tiled, out_auto):
        for got, want in zip(out, ref):
            assert jnp.allclose(got, want, rtol=1e-5, atol=1e-5), (got, want)

    print("KERNEL_OK")
</pallas_src>

<mosaic_0001>
module attributes {stable_mosaic.version = 11 : i64} {
  func.func @kernel(%arg0: i32, %arg1: i32, %arg2: memref<2x4096xf32, #tpu.memory_space<vmem>>, %arg3: memref<2x4096xf32, #tpu.memory_space<vmem>>, %arg4: memref<2x4096xf32, #tpu.memory_space<vmem>>, %arg5: memref<2x1xi32, #tpu.memory_space<vmem>>, %arg6: memref<2x8xf32, #tpu.memory_space<vmem>>, %arg7: memref<2x8xf32, #tpu.memory_space<vmem>>, %arg8: memref<2x8xf32, #tpu.memory_space<vmem>>, %arg9: memref<2x8xf32, #tpu.memory_space<vmem>>, %arg10: memref<2x8xf32, #tpu.memory_space<vmem>>, %arg11: memref<2x8xf32, #tpu.memory_space<vmem>>, %arg12: memref<2x8xf32, #tpu.memory_space<vmem>>, %arg13: memref<2x16x8xf32, #tpu.memory_space<vmem>>, %arg14: memref<2x8xi32, #tpu.memory_space<vmem>>, %arg15: memref<1x8x128xf32, #tpu.memory_space<vmem>>) attributes {dimension_semantics = [#tpu.dimension_semantics<parallel>, #tpu.dimension_semantics<arbitrary>], iteration_bounds = array<i64: 1, 3>, scalar_prefetch = 0 : i64, scratch_operands = 0 : i64, tpu.core_type = #tpu.core_type<tc>, window_params = [{transform_indices = @transform_0, window_bounds = array<i64: 2, 4096>}, {transform_indices = @transform_1, window_bounds = array<i64: 2, 4096>}, {transform_indices = @transform_2, window_bounds = array<i64: 2, 4096>}, {pipeline_mode = #tpu.pipeline_mode<synchronous>, transform_indices = @transform_3, window_bounds = array<i64: 2, 1>}, {pipeline_mode = #tpu.pipeline_mode<synchronous>, transform_indices = @transform_4, window_bounds = array<i64: 2, 8>}, {pipeline_mode = #tpu.pipeline_mode<synchronous>, transform_indices = @transform_5, window_bounds = array<i64: 2, 8>}, {pipeline_mode = #tpu.pipeline_mode<synchronous>, transform_indices = @transform_6, window_bounds = array<i64: 2, 8>}, {pipeline_mode = #tpu.pipeline_mode<synchronous>, transform_indices = @transform_7, window_bounds = array<i64: 2, 8>}, {pipeline_mode = #tpu.pipeline_mode<synchronous>, transform_indices = @transform_8, window_bounds = array<i64: 2, 8>}, {pipeline_mode = #tpu.pipeline_mode<synchronous>, transform_indices = @transform_9, window_bounds = array<i64: 2, 8>}, {pipeline_mode = #tpu.pipeline_mode<synchronous>, transform_indices = @transform_10, window_bounds = array<i64: 2, 8>}, {pipeline_mode = #tpu.pipeline_mode<synchronous>, transform_indices = @transform_11, window_bounds = array<i64: 2, 16, 8>}, {pipeline_mode = #tpu.pipeline_mode<synchronous>, transform_indices = @transform_12, window_bounds = array<i64: 2, 8>}, {transform_indices = @transform_13, window_bounds = array<i64: 1, 8, 128>}]} {
    %0 = tpu.iota {dimensions = array<i32: 2>} : vector<1x8x128xi32>
    %c0_i32 = arith.constant 0 : i32
    %1 = arith.cmpi eq, %arg1, %c0_i32 : i32
    %2 = arith.extui %1 : i1 to i32
    %c0_i32_0 = arith.constant 0 : i32
    %3 = arith.cmpi ne, %2, %c0_i32_0 : i32
    scf.if %3 {
      %cst_23 = arith.constant 0.000000e+00 : f32
      %51 = vector.broadcast %cst_23 : f32 to vector<1x8x128xf32>
      %c0_24 = arith.constant 0 : index
      %c0_25 = arith.constant 0 : index
      %c0_26 = arith.constant 0 : index
      %52 = vector.load %arg15[%c0_24, %c0_25, %c0_26] : memref<1x8x128xf32, #tpu.memory_space<vmem>>, vector<1x8x128xf32>
      tpu.vector_store %arg15[%c0_24, %c0_25, %c0_26], %51 {strides = array<i32>} : memref<1x8x128xf32, #tpu.memory_space<vmem>>, vector<1x8x128xf32>,
    } else {
    }
    %c0_i32_1 = arith.constant 0 : i32
    %4 = arith.cmpi eq, %arg0, %c0_i32_1 : i32
    %c0_i32_2 = arith.constant 0 : i32
    %5 = arith.cmpi eq, %arg1, %c0_i32_2 : i32
    %6 = arith.andi %4, %5 : i1
    %7 = arith.extui %6 : i1 to i32
    %c0_i32_3 = arith.constant 0 : i32
    %8 = arith.cmpi ne, %7, %c0_i32_3 : i32
    scf.if %8 {
      %c0_23 = arith.constant 0 : index
      %c0_24 = arith.constant 0 : index
      %51 = vector.load %arg12[%c0_23, %c0_24] : memref<2x8xf32, #tpu.memory_space<vmem>>, vector<2x8xf32>
      %c0_25 = arith.constant 0 : index
      %c0_26 = arith.constant 0 : index
      %52 = vector.load %arg11[%c0_25, %c0_26] : memref<2x8xf32, #tpu.memory_space<vmem>>, vector<2x8xf32>
      %cst_27 = arith.constant 1.000000e+00 : f32
      %53 = vector.broadcast %cst_27 : f32 to vector<2x8xf32>
      %54 = arith.addf %52, %53 : vector<2x8xf32>
      %55 = math.log %54 : vector<2x8xf32>
      %c0_28 = arith.constant 0 : index
      %c0_29 = arith.constant 0 : index
      %56 = vector.load %arg10[%c0_28, %c0_29] : memref<2x8xf32, #tpu.memory_space<vmem>>, vector<2x8xf32>
      %57 = arith.subf %56, %55 : vector<2x8xf32>
      %58 = arith.mulf %57, %57 : vector<2x8xf32>
      %59 = arith.mulf %58, %51 : vector<2x8xf32>
      %60 = vector.shape_cast %59 : vector<2x8xf32> to vector<1x2x8xf32>
      %cst_30 = arith.constant dense<0.000000e+00> : vector<1xf32>
      %61 = vector.multi_reduction <add>, %60, %cst_30 [1, 2] : vector<1x2x8xf32> to vector<1xf32>
      %62 = vector.shape_cast %61 : vector<1xf32> to vector<1x1x1xf32>
      %63 = vector.extract %62[0, 0, 0] : f32 from vector<1x1x1xf32>
      %c0_31 = arith.constant 0 : index
      %c0_32 = arith.constant 0 : index
      %64 = vector.load %arg6[%c0_31, %c0_32] : memref<2x8xf32, #tpu.memory_space<vmem>>, vector<2x8xf32>
      %c0_33 = arith.constant 0 : index
      %c0_34 = arith.constant 0 : index
      %65 = vector.load %arg7[%c0_33, %c0_34] : memref<2x8xf32, #tpu.memory_space<vmem>>, vector<2x8xf32>
      %66 = arith.subf %64, %65 : vector<2x8xf32>
      %67 = arith.mulf %66, %66 : vector<2x8xf32>
      %68 = arith.mulf %67, %51 : vector<2x8xf32>
      %69 = vector.shape_cast %68 : vector<2x8xf32> to vector<1x2x8xf32>
      %cst_35 = arith.constant dense<0.000000e+00> : vector<1xf32>
      %70 = vector.multi_reduction <add>, %69, %cst_35 [1, 2] : vector<1x2x8xf32> to vector<1xf32>
      %71 = vector.shape_cast %70 : vector<1xf32> to vector<1x1x1xf32>
      %72 = vector.extract %71[0, 0, 0] : f32 from vector<1x1x1xf32>
      %c0_36 = arith.constant 0 : index
      %c0_37 = arith.constant 0 : index
      %73 = vector.load %arg8[%c0_36, %c0_37] : memref<2x8xf32, #tpu.memory_space<vmem>>, vector<2x8xf32>
      %c0_38 = arith.constant 0 : index
      %c0_39 = arith.constant 0 : index
      %74 = vector.load %arg9[%c0_38, %c0_39] : memref<2x8xf32, #tpu.memory_space<vmem>>, vector<2x8xf32>
      %75 = arith.subf %73, %74 : vector<2x8xf32>
      %76 = arith.mulf %75, %75 : vector<2x8xf32>
      %77 = arith.mulf %76, %51 : vector<2x8xf32>
      %78 = vector.shape_cast %77 : vector<2x8xf32> to vector<1x2x8xf32>
      %cst_40 = arith.constant dense<0.000000e+00> : vector<1xf32>
      %79 = vector.multi_reduction <add>, %78, %cst_40 [1, 2] : vector<1x2x8xf32> to vector<1xf32>
      %80 = vector.shape_cast %79 : vector<1xf32> to vector<1x1x1xf32>
      %81 = vector.extract %80[0, 0, 0] : f32 from vector<1x1x1xf32>
      %c2_i32 = arith.constant 2 : i32
      %82 = vector.broadcast %c2_i32 : i32 to vector<1x8x128xi32>
      %83 = arith.cmpi eq, %0, %82 : vector<1x8x128xi32>
      %cst_41 = arith.constant 0.000000e+00 : f32
      %84 = vector.broadcast %63 : f32 to vector<1x8x128xf32>
      %85 = vector.broadcast %cst_41 : f32 to vector<1x8x128xf32>
      %86 = arith.select %83, %84, %85 : vector<1x8x128xi1>, vector<1x8x128xf32>
      %c0_i32_42 = arith.constant 0 : i32
      %87 = vector.broadcast %c0_i32_42 : i32 to vector<1x8x128xi32>
      %88 = arith.cmpi eq, %0, %87 : vector<1x8x128xi32>
      %cst_43 = arith.constant 0.000000e+00 : f32
      %89 = vector.broadcast %72 : f32 to vector<1x8x128xf32>
      %90 = vector.broadcast %cst_43 : f32 to vector<1x8x128xf32>
      %91 = arith.select %88, %89, %90 : vector<1x8x128xi1>, vector<1x8x128xf32>
      %92 = arith.addf %86, %91 : vector<1x8x128xf32>
      %c1_i32 = arith.constant 1 : i32
      %93 = vector.broadcast %c1_i32 : i32 to vector<1x8x128xi32>
      %94 = arith.cmpi eq, %0, %93 : vector<1x8x128xi32>
      %cst_44 = arith.constant 0.000000e+00 : f32
      %95 = vector.broadcast %81 : f32 to vector<1x8x128xf32>
      %96 = vector.broadcast %cst_44 : f32 to vector<1x8x128xf32>
      %97 = arith.select %94, %95, %96 : vector<1x8x128xi1>, vector<1x8x128xf32>
      %98 = arith.addf %92, %97 : vector<1x8x128xf32>
      %c0_45 = arith.constant 0 : index
      %c0_46 = arith.constant 0 : index
      %c0_47 = arith.constant 0 : index
      %99 = vector.load %arg13[%c0_45, %c0_46, %c0_47] : memref<2x16x8xf32, #tpu.memory_space<vmem>>, vector<2x16x8xf32>
      %c0_48 = arith.constant 0 : index
      %c0_49 = arith.constant 0 : index
      %100 = vector.load %arg14[%c0_48, %c0_49] : memref<2x8xi32, #tpu.memory_space<vmem>>, vector<2x8xi32>
      %cst_50 = arith.constant dense<0xFF800000> : vector<2x8xf32>
      %101 = vector.multi_reduction <maximumf>, %99, %cst_50 [1] : vector<2x16x8xf32> to vector<2x8xf32>
      %102 = vector.shape_cast %101 : vector<2x8xf32> to vector<2x1x8xf32>
      %103 = vector.broadcast %102 : vector<2x1x8xf32> to vector<2x16x8xf32>
      %104 = arith.subf %99, %103 : vector<2x16x8xf32>
      %105 = math.exp %104 : vector<2x16x8xf32>
      %cst_51 = arith.constant dense<0.000000e+00> : vector<2x8xf32>
      %106 = vector.multi_reduction <add>, %105, %cst_51 [1] : vector<2x16x8xf32> to vector<2x8xf32>
      %107 = math.log %106 : vector<2x8xf32>
      %108 = vector.shape_cast %102 : vector<2x1x8xf32> to vector<2x8xf32>
      %109 = arith.addf %107, %108 : vector<2x8xf32>
      %110 = tpu.iota {dimensions = array<i32: 1>} : vector<2x16x8xi32>
      %111 = vector.shape_cast %100 : vector<2x8xi32> to vector<2x1x8xi32>
      %112 = vector.broadcast %111 : vector<2x1x8xi32> to vector<2x16x8xi32>
      %113 = arith.cmpi eq, %110, %112 : vector<2x16x8xi32>
      %cst_52 = arith.constant 0.000000e+00 : f32
      %114 = vector.broadcast %cst_52 : f32 to vector<2x16x8xf32>
      %115 = arith.select %113, %99, %114 : vector<2x16x8xi1>, vector<2x16x8xf32>
      %cst_53 = arith.constant dense<0.000000e+00> : vector<2x8xf32>
      %116 = vector.multi_reduction <add>, %115, %cst_53 [1] : vector<2x16x8xf32> to vector<2x8xf32>
      %c0_i32_54 = arith.constant 0 : i32
      %117 = vector.broadcast %c0_i32_54 : i32 to vector<2x8xi32>
      %118 = arith.cmpi sge, %100, %117 : vector<2x8xi32>
      %119 = arith.subf %109, %116 : vector<2x8xf32>
      %cst_55 = arith.constant 0.000000e+00 : f32
      %120 = vector.broadcast %cst_55 : f32 to vector<2x8xf32>
      %121 = arith.select %118, %119, %120 : vector<2x8xi1>, vector<2x8xf32>
      %122 = vector.shape_cast %121 : vector<2x8xf32> to vector<1x2x8xf32>
      %cst_56 = arith.constant dense<0.000000e+00> : vector<1xf32>
      %123 = vector.multi_reduction <add>, %122, %cst_56 [1, 2] : vector<1x2x8xf32> to vector<1xf32>
      %124 = vector.shape_cast %123 : vector<1xf32> to vector<1x1x1xf32>
      %125 = vector.extract %124[0, 0, 0] : f32 from vector<1x1x1xf32>
      %c5_i32 = arith.constant 5 : i32
      %126 = vector.broadcast %c5_i32 : i32 to vector<1x8x128xi32>
      %127 = arith.cmpi eq, %0, %126 : vector<1x8x128xi32>
      %cst_57 = arith.constant 0.000000e+00 : f32
      %128 = vector.broadcast %125 : f32 to vector<1x8x128xf32>
      %129 = vector.broadcast %cst_57 : f32 to vector<1x8x128xf32>
      %130 = arith.select %127, %128, %129 : vector<1x8x128xi1>, vector<1x8x128xf32>
      %131 = arith.addf %98, %130 : vector<1x8x128xf32>
      %c0_58 = arith.constant 0 : index
      %c0_59 = arith.constant 0 : index
      %c0_60 = arith.constant 0 : index
      %132 = vector.load %arg15[%c0_58, %c0_59, %c0_60] : memref<1x8x128xf32, #tpu.memory_space<vmem>>, vector<1x8x128xf32>
      %133 = arith.addf %132, %131 : vector<1x8x128xf32>
      %c0_61 = arith.constant 0 : index
      %c0_62 = arith.constant 0 : index
      %c0_63 = arith.constant 0 : index
      %134 = vector.load %arg15[%c0_61, %c0_62, %c0_63] : memref<1x8x128xf32, #tpu.memory_space<vmem>>, vector<1x8x128xf32>
      tpu.vector_store %arg15[%c0_61, %c0_62, %c0_63], %133 {strides = array<i32>} : memref<1x8x128xf32, #tpu.memory_space<vmem>>, vector<1x8x128xf32>,
    } else {
    }
    %c0 = arith.constant 0 : index
    %c0_4 = arith.constant 0 : index
    %9 = vector.load %arg2[%c0, %c0_4] : memref<2x4096xf32, #tpu.memory_space<vmem>>, vector<2x4096xf32>
    %c0_5 = arith.constant 0 : index
    %c0_6 = arith.constant 0 : index
    %10 = vector.load %arg3[%c0_5, %c0_6] : memref<2x4096xf32, #tpu.memory_space<vmem>>, vector<2x4096xf32>
    %c0_7 = arith.constant 0 : index
    %c0_8 = arith.constant 0 : index
    %11 = vector.load %arg4[%c0_7, %c0_8] : memref<2x4096xf32, #tpu.memory_space<vmem>>, vector<2x4096xf32>
    %c3_i32 = arith.constant 3 : i32
    %12 = arith.muli %arg0, %c3_i32 : i32
    %13 = arith.addi %12, %arg1 : i32
    %c4096_i32 = arith.constant 4096 : i32
    %14 = arith.muli %13, %c4096_i32 : i32
    %15 = tpu.iota {dimensions = array<i32: 1>} : vector<2x4096xi32>
    %16 = vector.broadcast %14 : i32 to vector<2x4096xi32>
    %17 = arith.addi %15, %16 : vector<2x4096xi32>
    %c0_9 = arith.constant 0 : index
    %c0_10 = arith.constant 0 : index
    %18 = vector.load %arg5[%c0_9, %c0_10] : memref<2x1xi32, #tpu.memory_space<vmem>>, vector<2x1xi32>
    %19 = vector.broadcast %18 : vector<2x1xi32> to vector<2x4096xi32>
    %20 = arith.cmpi slt, %17, %19 : vector<2x4096xi32>
    %21 = arith.subf %10, %9 : vector<2x4096xf32>
    %22 = math.absf %21 : vector<2x4096xf32>
    %cst = arith.constant 0.000000e+00 : f32
    %23 = vector.broadcast %cst : f32 to vector<2x4096xf32>
    %24 = arith.select %20, %22, %23 : vector<2x4096xi1>, vector<2x4096xf32>
    %25 = vector.shape_cast %24 : vector<2x4096xf32> to vector<1x2x4096xf32>
    %cst_11 = arith.constant dense<0.000000e+00> : vector<1xf32>
    %26 = vector.multi_reduction <add>, %25, %cst_11 [1, 2] : vector<1x2x4096xf32> to vector<1xf32>
    %27 = vector.shape_cast %26 : vector<1xf32> to vector<1x1x1xf32>
    %28 = vector.extract %27[0, 0, 0] : f32 from vector<1x1x1xf32>
    %29 = arith.subf %11, %9 : vector<2x4096xf32>
    %30 = math.absf %29 : vector<2x4096xf32>
    %cst_12 = arith.constant 0.000000e+00 : f32
    %31 = vector.broadcast %cst_12 : f32 to vector<2x4096xf32>
    %32 = arith.select %20, %30, %31 : vector<2x4096xi1>, vector<2x4096xf32>
    %33 = vector.shape_cast %32 : vector<2x4096xf32> to vector<1x2x4096xf32>
    %cst_13 = arith.constant dense<0.000000e+00> : vector<1xf32>
    %34 = vector.multi_reduction <add>, %33, %cst_13 [1, 2] : vector<1x2x4096xf32> to vector<1xf32>
    %35 = vector.shape_cast %34 : vector<1xf32> to vector<1x1x1xf32>
    %36 = vector.extract %35[0, 0, 0] : f32 from vector<1x1x1xf32>
    %c0_14 = arith.constant 0 : index
    %c0_15 = arith.constant 0 : index
    %c0_16 = arith.constant 0 : index
    %37 = vector.load %arg15[%c0_14, %c0_15, %c0_16] : memref<1x8x128xf32, #tpu.memory_space<vmem>>, vector<1x8x128xf32>
    %c3_i32_17 = arith.constant 3 : i32
    %38 = vector.broadcast %c3_i32_17 : i32 to vector<1x8x128xi32>
    %39 = arith.cmpi eq, %0, %38 : vector<1x8x128xi32>
    %cst_18 = arith.constant 0.000000e+00 : f32
    %40 = vector.broadcast %28 : f32 to vector<1x8x128xf32>
    %41 = vector.broadcast %cst_18 : f32 to vector<1x8x128xf32>
    %42 = arith.select %39, %40, %41 : vector<1x8x128xi1>, vector<1x8x128xf32>
    %c4_i32 = arith.constant 4 : i32
    %43 = vector.broadcast %c4_i32 : i32 to vector<1x8x128xi32>
    %44 = arith.cmpi eq, %0, %43 : vector<1x8x128xi32>
    %cst_19 = arith.constant 0.000000e+00 : f32
    %45 = vector.broadcast %36 : f32 to vector<1x8x128xf32>
    %46 = vector.broadcast %cst_19 : f32 to vector<1x8x128xf32>
    %47 = arith.select %44, %45, %46 : vector<1x8x128xi1>, vector<1x8x128xf32>
    %48 = arith.addf %42, %47 : vector<1x8x128xf32>
    %49 = arith.addf %37, %48 : vector<1x8x128xf32>
    %c0_20 = arith.constant 0 : index
    %c0_21 = arith.constant 0 : index
    %c0_22 = arith.constant 0 : index
    %50 = vector.load %arg15[%c0_20, %c0_21, %c0_22] : memref<1x8x128xf32, #tpu.memory_space<vmem>>, vector<1x8x128xf32>
    tpu.vector_store %arg15[%c0_20, %c0_21, %c0_22], %49 {strides = array<i32>} : memref<1x8x128xf32, #tpu.memory_space<vmem>>, vector<1x8x128xf32>,
    return
  }
  func.func @transform_0(%arg0: i32, %arg1: i32) -> (i32, i32) {
    %c3_i32 = arith.constant 3 : i32
    %0 = arith.muli %arg0, %c3_i32 : i32
    %1 = arith.addi %0, %arg1 : i32
    %c0_i32 = arith.constant 0 : i32
    %c0_i32_0 = arith.constant 0 : i32
    return %c0_i32, %1 : i32, i32
  }
  func.func @transform_1(%arg0: i32, %arg1: i32) -> (i32, i32) {
    %c3_i32 = arith.constant 3 : i32
    %0 = arith.muli %arg0, %c3_i32 : i32
    %1 = arith.addi %0, %arg1 : i32
    %c0_i32 = arith.constant 0 : i32
    %c0_i32_0 = arith.constant 0 : i32
    return %c0_i32, %1 : i32, i32
  }
  func.func @transform_2(%arg0: i32, %arg1: i32) -> (i32, i32) {
    %c3_i32 = arith.constant 3 : i32
    %0 = arith.muli %arg0, %c3_i32 : i32
    %1 = arith.addi %0, %arg1 : i32
    %c0_i32 = arith.constant 0 : i32
    %c0_i32_0 = arith.constant 0 : i32
    return %c0_i32, %1 : i32, i32
  }
  func.func @transform_3(%arg0: i32, %arg1: i32) -> (i32, i32) {
    %c0_i32 = arith.constant 0 : i32
    %c0_i32_0 = arith.constant 0 : i32
    %c0_i32_1 = arith.constant 0 : i32
    return %c0_i32, %c0_i32_0 : i32, i32
  }
  func.func @transform_4(%arg0: i32, %arg1: i32) -> (i32, i32) {
    %c0_i32 = arith.constant 0 : i32
    %c0_i32_0 = arith.constant 0 : i32
    %c0_i32_1 = arith.constant 0 : i32
    return %c0_i32, %c0_i32_0 : i32, i32
  }
  func.func @transform_5(%arg0: i32, %arg1: i32) -> (i32, i32) {
    %c0_i32 = arith.constant 0 : i32
    %c0_i32_0 = arith.constant 0 : i32
    %c0_i32_1 = arith.constant 0 : i32
    return %c0_i32, %c0_i32_0 : i32, i32
  }
  func.func @transform_6(%arg0: i32, %arg1: i32) -> (i32, i32) {
    %c0_i32 = arith.constant 0 : i32
    %c0_i32_0 = arith.constant 0 : i32
    %c0_i32_1 = arith.constant 0 : i32
    return %c0_i32, %c0_i32_0 : i32, i32
  }
  func.func @transform_7(%arg0: i32, %arg1: i32) -> (i32, i32) {
    %c0_i32 = arith.constant 0 : i32
    %c0_i32_0 = arith.constant 0 : i32
    %c0_i32_1 = arith.constant 0 : i32
    return %c0_i32, %c0_i32_0 : i32, i32
  }
  func.func @transform_8(%arg0: i32, %arg1: i32) -> (i32, i32) {
    %c0_i32 = arith.constant 0 : i32
    %c0_i32_0 = arith.constant 0 : i32
    %c0_i32_1 = arith.constant 0 : i32
    return %c0_i32, %c0_i32_0 : i32, i32
  }
  func.func @transform_9(%arg0: i32, %arg1: i32) -> (i32, i32) {
    %c0_i32 = arith.constant 0 : i32
    %c0_i32_0 = arith.constant 0 : i32
    %c0_i32_1 = arith.constant 0 : i32
    return %c0_i32, %c0_i32_0 : i32, i32
  }
  func.func @transform_10(%arg0: i32, %arg1: i32) -> (i32, i32) {
    %c0_i32 = arith.constant 0 : i32
    %c0_i32_0 = arith.constant 0 : i32
    %c0_i32_1 = arith.constant 0 : i32
    return %c0_i32, %c0_i32_0 : i32, i32
  }
  func.func @transform_11(%arg0: i32, %arg1: i32) -> (i32, i32, i32) {
    %c0_i32 = arith.constant 0 : i32
    %c0_i32_0 = arith.constant 0 : i32
    %c0_i32_1 = arith.constant 0 : i32
    %c0_i32_2 = arith.constant 0 : i32
    return %c0_i32, %c0_i32_0, %c0_i32_1 : i32, i32, i32
  }
  func.func @transform_12(%arg0: i32, %arg1: i32) -> (i32, i32) {
    %c0_i32 = arith.constant 0 : i32
    %c0_i32_0 = arith.constant 0 : i32
    %c0_i32_1 = arith.constant 0 : i32
    return %c0_i32, %c0_i32_0 : i32, i32
  }
  func.func @transform_13(%arg0: i32, %arg1: i32) -> (i32, i32, i32) {
    %c0_i32 = arith.constant 0 : i32
    %c0_i32_0 = arith.constant 0 : i32
    %c0_i32_1 = arith.constant 0 : i32
    return %arg0, %c0_i32, %c0_i32_0 : i32, i32, i32
  }
}

</mosaic_0001>

<bundles_post_ra>
// kernel: tpu_custom_call.1
= control target key start
LH: loop header
LB: loop body
LE: loop exit
PB: predicated region body
PF: predicated region fallthrough
CT: control target
= control target key end

     0   :  { %s2878_s0 = inlined_call_operand.hbm [shape: f32[2,9600], index: 0, kind: input, shape index: {}]   ;;  %s2879_s1 = inlined_call_operand.hbm [shape: f32[2,9600], index: 1, kind: input, shape index: {}]   ;;  %s2880_s2 = inlined_call_operand.hbm [shape: f32[2,9600], index: 2, kind: input, shape index: {}]   ;;  %s2881_s3 = inlined_call_operand.vmem [shape: s32[2,1], index: 3, kind: input, shape index: {}]   ;;  %s2882_s4 = inlined_call_operand.vmem [shape: f32[2,8], index: 4, kind: input, shape index: {}]   ;;  %s2883_s5 = inlined_call_operand.vmem [shape: f32[2,8], index: 5, kind: input, shape index: {}]   ;;  %s2884_s6 = inlined_call_operand.vmem [shape: f32[2,8], index: 6, kind: input, shape index: {}]   ;;  %s2885_s7 = inlined_call_operand.vmem [shape: f32[2,8], index: 7, kind: input, shape index: {}]   ;;  %s2886_s8 = inlined_call_operand.vmem [shape: f32[2,8], index: 8, kind: input, shape index: {}]   ;;  %s2887_s9 = inlined_call_operand.vmem [shape: f32[2,8], index: 9, kind: input, shape index: {}]   ;;  %s2888_s10 = inlined_call_operand.vmem [shape: f32[2,8], index: 10, kind: input, shape index: {}]   ;;  %s2889_s11 = inlined_call_operand.vmem [shape: f32[2,16,8], index: 11, kind: input, shape index: {}]   ;;  %s2890_s12 = inlined_call_operand.vmem [shape: s32[2,8], index: 12, kind: input, shape index: {}]   ;;  %s2891_s13 = inlined_call_operand.hbm [shape: f32[1,8,128], index: 13, kind: output, shape index: {}]  }
   0x1   :  { %2894 = sst [smem:[#allocation40_spill]] %s2881_s3 }
   0x2   :  { %2895 = sst [smem:[#allocation41_spill]] %s2882_s4 }
   0x3   :  { %2896 = sst [smem:[#allocation42_spill]] %s2883_s5 }
   0x4   :  { %2897 = sst [smem:[#allocation43_spill]] %s2886_s8 }
   0x5   :  { %2898 = sst [smem:[#allocation44_spill]] %s2888_s10 }
   0x6   :  { %2899 = sst [smem:[#allocation45_spill]] %s2889_s11 }
   0x7   :  { %2900 = sst [smem:[#allocation46_spill]] %s2890_s12 }
   0x8   :  { %2901 = sst [smem:[#allocation47_spill]] %s2891_s13 }
   0x9   :  { %18 = vsyncpa [#allocation3], 0 }
   0xa   :  { %20 = vsyncpa [#allocation3 + $0x1], 0 }
   0xb   :  { %21 = vsyncpa [#allocation6], 0 }
   0xc   :  { %23 = vsyncpa [#allocation6 + $0x1], 0 }
   0xd   :  { %24 = vsyncpa [#allocation4], 0  ;;  %s1860_s25 = smov 0   ;;  %s1862_s26 = smov 0  }
   0xe   :  { %s1864_s27 = smov 0   ;;  %s1866_s28 = smov 0  }
   0xf   :  { %s1868_s29 = smov 0   ;;  %s1870_s30 = smov 0  }
  0x10 LB: > { %s1889_s14 = sadd.s32 4294967295, %s1782_s30   ;;  %s39_s15 = sadd.s32 1, %s1778_s29  ;;  %s1782_s30 = sphi %s1870_s30, %s30_s30   ;;  %s1778_s29 = sphi %s1868_s29, %s2979_s29   ;;  %s1774_s28 = sphi %s1866_s28, %s2978_s28   ;;  %s1770_s27 = sphi %s1864_s27, %s2977_s27   ;;  %s1766_s26 = sphi %s1862_s26, %s2976_s26   ;;  %s1762_s25 = sphi %s1860_s25, %s2975_s25  }
  0x11   : > { %p40_p0 = scmp.ge.s32.totalorder %s39_s15, 3  ;;  %s53_s16 = sadd.s32 1, %s1770_s27 }
  0x12   : > { %p60_p1 = scmp.ne.s32.totalorder %s1770_s27, %s1766_s26  ;;  %p61_p2 = scmp.eq.s32.totalorder %s1782_s30, 0 }
  0x13   : > { %s2981_s15 = smov (%p40_p0, %s39_s15), 0  ;;  %p66_p4 = scmp.ne.s32.totalorder %s1766_s26, %s1762_s25 }
  0x14   : > { %2902 = sst [smem:[#allocation12_spill]] %s2981_s15  ;;  %p1898_p3 = por %p61_p2, %p60_p1 }
  0x15   : > { %s50_s18 = ssub.s32 %s1778_s29, %s2981_s15  ;;  %p67_p5 = scmp.eq.s32.totalorder %s1889_s14, 0 }
  0x16   : > { %p51_p6 = scmp.eq.s32.totalorder %s50_s18, 0  ;;  %p1455_p8 = scmp.ge.s32.totalorder %s1782_s30, 3 }
  0x17   : > { %p1906_p7 = por %p67_p5, %p66_p4 }
  0x18   : > { %s1911_s20 = scalar_select %p51_p6, %s1770_s27, %s53_s16  }
  0x19   : > { %412 = sbr.rel (%p1455_p8) target bundleno = 135 (0x87), region = 56 }
  0x1a   : > { %2905 = sst [smem:[#allocation13_spill]] %s1911_s20 }
  0x1e   : > { %415 = sbr.rel (!%p1898_p3) target bundleno = 65 (0x41), region = 60  ;;  %s416_s21 = sand.u32 (%p1898_p3), 1, %s1770_s27  }
  0x1f   : > { %s1457_s22 = sshll.u32 (%p1898_p3), %s1778_s29, 5  ;;  %s1456_s23 = sshll.u32 (%p1898_p3), %s416_s21, 6 }
  0x20   : > { %s424_s24 = ssub.s32 (%p1898_p3), 75, %s1457_s22  ;;  %s1921_s15 = scalar_lea.sflag (%p1898_p3), [#allocation3], %s416_s21 }
  0x21   : > { %p425_p9 = scmp.lt.s32.totalorder (%p1898_p3), %s424_s24, 32  ;;  %s420_s20 = scalar_lea.vmem (%p1898_p3), [#allocation2], %s1456_s23 }
  0x23   : > { %s2983_s24 = smov (!%p425_p9, %s424_s24), 32 }
  0x24   : > { %s1458_s25 = sshll.u32 %s2983_s24, 1 }
  0x25   : > { %s428_s18 = ssub.s32 64, %s1458_s25 }
  0x26   : > { %s429_s16 = sshll.u32 %s428_s18, 4 }
  0x27   : > { %430 = vsyncadd %s1921_s15, %s429_s16  ;;  %p1924_p10 = scmp.ne.s32.totalorder %s1458_s25, 0  ;;  %s1488_s22 = sshll.u32 %s1778_s29, 6 }
  0x28   : > { %s433_s5 = scalar_lea.hbm %s2878_s0, %s1488_s22  ;;  %s1462_s4 = sshll.u32 %s2983_s24, 5 }
  0x29   : > { %s436_s18 = sshll.u32 %s433_s5, 4  ;;  %s438_s21 = sshll.u32 %s420_s20, 4  ;;  %s437_s18 = int_to_ptr.hbm [resolvable:$true] %s436_s18  ;;  %s439_s21 = int_to_ptr.vmem [resolvable:$true] %s438_s21 }
  0x2a   : > { %s1579_s23 = sshra.s32 %s437_s18, 4  ;;  %s1581_s16 = sshrl.u32 %s1462_s4, 4  ;;  %s1580_s23 = int_to_ptr.hbm [resolvable:$true] %s1579_s23 }
  0x2b   : > { %s1586_s8 = scalar_lea.hbm %s1580_s23, %s1581_s16  ;;  %s1590_s11 = scalar_lea.hbm %s2878_s0, 150 }
  0x2c   : > { %p1587_p11 = scmp.ne.s32.totalorder %s1580_s23, %s1586_s8  ;;  %p1592_p0 = scmp.lt.s32.totalorder %s1590_s11, %s1586_s8 }
  0x2e   : > { %p1588_p12 = pnand %p1587_p11, %p1924_p10 }
  0x30   : > { %p1589_p13 = pneg %p1588_p12 }
  0x32   : > { %p1594_p1 = pnand %p1592_p0, %p1589_p13 }
  0x34   : > { %1597 = shalt.err (!%p1594_p1)
}
  0x35   : > { %s1598_s3 = sshra.s32 %s439_s21, 4  ;;  %s1784_s12 = smov [#allocation2]   ;;  %s1599_s3 = int_to_ptr.vmem [resolvable:$true] %s1598_s3 }
  0x36   : > { %s1605_s5 = scalar_lea.vmem %s1599_s3, %s1581_s16  ;;  %s1609_s20 = scalar_lea.vmem %s1784_s12, 128 }
  0x37   : > { %p1606_p2 = scmp.ne.s32.totalorder %s1599_s3, %s1605_s5  ;;  %p1611_p6 = scmp.lt.s32.totalorder %s1609_s20, %s1605_s5 }
  0x39   : > { %p1607_p4 = pnand %p1606_p2, %p1924_p10 }
  0x3b   : > { %p1608_p5 = pneg %p1607_p4 }
  0x3d   : > { %p1613_p8 = pnand %p1611_p6, %p1608_p5 }
  0x3f   : > { %1616 = shalt.err (!%p1613_p8)
}
  0x40   : > { %441 = dma.hbm_to_vmem [thread:$0]  (%p1924_p10), %s437_s18, %s1462_s4, %s439_s21, %s1921_s15  }
  0x41 PF: > { %444 = sbr.rel (!%p1898_p3) target bundleno = 100 (0x64), region = 64  ;;  %s445_s8 = sand.u32 (%p1898_p3), 1, %s1782_s30  }
  0x42   : > { %s447_s10 = sand.u32 (%p1898_p3), 1, %s1770_s27   ;;  %s1464_s22 = sshll.u32 (%p1898_p3), %s1778_s29, 5 }
  0x43   : > { %s1463_s11 = sshll.u32 (%p1898_p3), %s447_s10, 6  ;;  %s453_s23 = ssub.s32 (%p1898_p3), 75, %s1464_s22 }
  0x44   : > { %p454_p9 = scmp.lt.s32.totalorder (%p1898_p3), %s453_s23, 32  ;;  %s1955_s4 = scalar_lea.sflag (%p1898_p3), [#allocation6], %s445_s8 }
  0x45   : > { %s449_s15 = scalar_lea.vmem (%p1898_p3), [#allocation5], %s1463_s11 }
  0x46   : > { %s2985_s23 = smov (!%p454_p9, %s453_s23), 32 }
  0x47   : > { %s1465_s13 = sshll.u32 %s2985_s23, 1 }
  0x48   : > { %s457_s16 = ssub.s32 64, %s1465_s13 }
  0x49   : > { %s458_s24 = sshll.u32 %s457_s16, 4 }
  0x4a   : > { %459 = vsyncadd %s1955_s4, %s458_s24  ;;  %p1958_p10 = scmp.ne.s32.totalorder %s1465_s13, 0  ;;  %s1489_s21 = sshll.u32 %s1778_s29, 6 }
  0x4b   : > { %s462_s5 = scalar_lea.hbm %s2879_s1, %s1489_s21  ;;  %s1469_s12 = sshll.u32 %s2985_s23, 5 }
  0x4c   : > { %s465_s20 = sshll.u32 %s462_s5, 4  ;;  %s467_s8 = sshll.u32 %s449_s15, 4  ;;  %s466_s20 = int_to_ptr.hbm [resolvable:$true] %s465_s20  ;;  %s468_s8 = int_to_ptr.vmem [resolvable:$true] %s467_s8 }
  0x4d   : > { %s1618_s10 = sshra.s32 %s466_s20, 4  ;;  %s1620_s11 = sshrl.u32 %s1469_s12, 4  ;;  %s1619_s10 = int_to_ptr.hbm [resolvable:$true] %s1618_s10 }
  0x4e   : > { %s1625_s22 = scalar_lea.hbm %s1619_s10, %s1620_s11  ;;  %s1629_s24 = scalar_lea.hbm %s2879_s1, 150 }
  0x4f   : > { %p1626_p11 = scmp.ne.s32.totalorder %s1619_s10, %s1625_s22  ;;  %p1631_p0 = scmp.lt.s32.totalorder %s1629_s24, %s1625_s22 }
  0x51   : > { %p1627_p12 = pnand %p1626_p11, %p1958_p10 }
  0x53   : > { %p1628_p13 = pneg %p1627_p12 }
  0x55   : > { %p1633_p1 = pnand %p1631_p0, %p1628_p13 }
  0x57   : > { %1636 = shalt.err (!%p1633_p1)
}
  0x58   : > { %s1637_s21 = sshra.s32 %s468_s8, 4  ;;  %s1785_s25 = smov [#allocation5]   ;;  %s1638_s21 = int_to_ptr.vmem [resolvable:$true] %s1637_s21 }
  0x59   : > { %s1644_s15 = scalar_lea.vmem %s1638_s21, %s1620_s11  ;;  %s1648_s3 = scalar_lea.vmem %s1785_s25, 128 }
  0x5a   : > { %p1645_p2 = scmp.ne.s32.totalorder %s1638_s21, %s1644_s15  ;;  %p1650_p6 = scmp.lt.s32.totalorder %s1648_s3, %s1644_s15 }
  0x5c   : > { %p1646_p4 = pnand %p1645_p2, %p1958_p10 }
  0x5e   : > { %p1647_p5 = pneg %p1646_p4 }
  0x60   : > { %p1652_p8 = pnand %p1650_p6, %p1647_p5 }
  0x62   : > { %1655 = shalt.err (!%p1652_p8)
}
  0x63   : > { %470 = dma.hbm_to_vmem [thread:$0]  (%p1958_p10), %s466_s20, %s1469_s12, %s468_s8, %s1955_s4  }
  0x64 PF: > { %473 = sbr.rel (!%p1898_p3) target bundleno = 135 (0x87), region = 68  ;;  %s474_s5 = sand.u32 (%p1898_p3), 1, %s1782_s30  }
  0x65   : > { %s476_s10 = sand.u32 (%p1898_p3), 1, %s1770_s27   ;;  %s1471_s22 = sshll.u32 (%p1898_p3), %s1778_s29, 5 }
  0x66   : > { %s1470_s11 = sshll.u32 (%p1898_p3), %s476_s10, 6  ;;  %s482_s13 = ssub.s32 (%p1898_p3), 75, %s1471_s22 }
  0x67   : > { %p483_p9 = scmp.lt.s32.totalorder (%p1898_p3), %s482_s13, 32  ;;  %s1989_s4 = scalar_lea.sflag (%p1898_p3), [#allocation6], %s474_s5 }
  0x68   : > { %s478_s17 = scalar_lea.vmem (%p1898_p3), [#allocation7], %s1470_s11 }
  0x69   : > { %s2987_s13 = smov (!%p483_p9, %s482_s13), 32 }
  0x6a   : > { %s1472_s18 = sshll.u32 %s2987_s13, 1 }
  0x6b   : > { %s486_s16 = ssub.s32 64, %s1472_s18 }
  0x6c   : > { %s487_s23 = sshll.u32 %s486_s16, 4 }
  0x6d   : > { %488 = vsyncadd %s1989_s4, %s487_s23  ;;  %p1992_p3 = scmp.ne.s32.totalorder %s1472_s18, 0  ;;  %s1490_s20 = sshll.u32 %s1778_s29, 6 }
  0x6e   : > { %s491_s21 = scalar_lea.hbm %s2880_s2, %s1490_s20  ;;  %s1476_s15 = sshll.u32 %s2987_s13, 5 }
  0x6f   : > { %s494_s25 = sshll.u32 %s491_s21, 4  ;;  %s496_s3 = sshll.u32 %s478_s17, 4  ;;  %s495_s25 = int_to_ptr.hbm [resolvable:$true] %s494_s25  ;;  %s497_s3 = int_to_ptr.vmem [resolvable:$true] %s496_s3 }
  0x70   : > { %s1657_s5 = sshra.s32 %s495_s25, 4  ;;  %s1659_s10 = sshrl.u32 %s1476_s15, 4  ;;  %s1658_s5 = int_to_ptr.hbm [resolvable:$true] %s1657_s5 }
  0x71   : > { %s1664_s11 = scalar_lea.hbm %s1658_s5, %s1659_s10  ;;  %s1668_s16 = scalar_lea.hbm %s2880_s2, 150 }
  0x72   : > { %p1665_p10 = scmp.ne.s32.totalorder %s1658_s5, %s1664_s11  ;;  %p1670_p13 = scmp.lt.s32.totalorder %s1668_s16, %s1664_s11 }
  0x74   : > { %p1666_p11 = pnand %p1665_p10, %p1992_p3 }
  0x76   : > { %p1667_p12 = pneg %p1666_p11 }
  0x78   : > { %p1672_p0 = pnand %p1670_p13, %p1667_p12 }
  0x7a   : > { %1675 = shalt.err (!%p1672_p0)
}
  0x7b   : > { %s1676_s23 = sshra.s32 %s497_s3, 4  ;;  %s1786_s20 = smov [#allocation7]   ;;  %s1677_s23 = int_to_ptr.vmem [resolvable:$true] %s1676_s23 }
  0x7c   : > { %s1683_s17 = scalar_lea.vmem %s1677_s23, %s1659_s10  ;;  %s1687_s8 = scalar_lea.vmem %s1786_s20, 128 }
  0x7d   : > { %p1684_p1 = scmp.ne.s32.totalorder %s1677_s23, %s1683_s17  ;;  %p1689_p5 = scmp.lt.s32.totalorder %s1687_s8, %s1683_s17 }
  0x7f   : > { %p1685_p2 = pnand %p1684_p1, %p1992_p3 }
  0x81   : > { %p1686_p4 = pneg %p1685_p2 }
  0x83   : > { %p1691_p6 = pnand %p1689_p5, %p1686_p4 }
  0x85   : > { %1694 = shalt.err (!%p1691_p6)
}
  0x86   : > { %499 = dma.hbm_to_vmem [thread:$0]  (%p1992_p3), %s495_s25, %s1476_s15, %s497_s3, %s1989_s4  }
  0x87 PF: > { %p1477_p8 = scmp.ge.s32.totalorder %s1782_s30, 1  ;;  %p501_p9 = scmp.lt.s32.totalorder %s1782_s30, 4 }
  0x89   : > { %p502_p10 = pnand %p1477_p8, %p501_p9 }
  0x8b   : > { %505 = sbr.rel (%p502_p10) target bundleno = 803 (0x323), region = 72 }
  0x90   : > { %s507_s24 = sand.u32 1, %s1766_s26  }
  0x91   : > { %s1478_s21 = sshll.u32 %s507_s24, 6  ;;  %s508_s5 = scalar_lea.sflag [#allocation3], %s507_s24 }
  0x92   : > { %s2018_s10 = scalar_lea.vmem [#allocation2], %s1478_s21 }
  0x93   : > { %1749 = dma.done.wait (%p1906_p7), %s508_s5, 1024  }
  0x94   : > { %1751 = vsyncadd (%p1906_p7), %s508_s5, 4294966272  ;;  %s517_s13 = sand.u32 1, %s1889_s14   ;;  %s2025_s12 = scalar_lea.vmem [#allocation5], %s1478_s21 }
  0x95   : > { %s518_s4 = scalar_lea.sflag [#allocation6], %s517_s13 }
  0x96   : > { %1753 = dma.done.wait (%p1906_p7), %s518_s4, 2048  }
  0x97   : > { %1755 = vsyncadd (%p1906_p7), %s518_s4, 4294965248  ;;  %v601_v0 = vlaneseq  ;;  %p603_p3 = scmp.eq.s32.totalorder %s1774_s28, 0  ;;  %s2034_s15 = scalar_lea.vmem [#allocation7], %s1478_s21 }
  0x98   : > { %p1481_p11 = scmp.ne.s32.totalorder %s1774_s28, 0 }
  0x99   : > { %v2032_v1 = vand.u32 127, %v601_v0 }
  0x9a   : > { %606 = sbr.rel (%p1481_p11) target bundleno = 161 (0xa1), region = 88 }
  0x9f   : > { %v1787_v2 = vmov 0.0  }
  0xa0   : > { %607 = vst [vmem:[#allocation8] sm:$0xff] %v1787_v2 }
  0xa1 PF: > { %612 = sbr.rel (!%p603_p3) target bundleno = 413 (0x19d), region = 92  ;;  %v614_v3 = vld [vmem:[%s2887_s9] sm:$0x3] (%p603_p3)  ;;  %s2909_s17 = sld [smem:[#allocation45_spill]] (%p603_p3)  ;;  %vm679_vm0 = vcmask (%p603_p3), 64512   ;;  %vm622_vm1 = vcmask (%p603_p3), 58368  }
  0xa2   : > { %v615_v4 = vadd.f32 (%p603_p3), 1.0, %v614_v3  ;;  %v648_v5 = vld [vmem:[%s2884_s6] sm:$0x3] (%p603_p3)  ;;  %s2910_s3 = sld [smem:[#allocation44_spill]] (%p603_p3)  ;;  %v735_v36 = vshrl.u32 (%p603_p3), %v601_v0, 7  ;;  %vm771_vm6 = vcmask (%p603_p3), 1041409  }
  0xa3   : > { %v649_v6 = vld [vmem:[%s2885_s7] sm:$0x3] (%p603_p3)  ;;  %s2911_s22 = sld [smem:[#allocation43_spill]] (%p603_p3)  ;;  %vm663_vm8 = vcmp.eq.s32.totalorder (%p603_p3), %v2032_v1, 2  ;;  %vm666_vm9 = vcmp.eq.s32.totalorder (%p603_p3), %v2032_v1, 0  ;;  %vm670_vm10 = vcmp.eq.s32.totalorder (%p603_p3), %v2032_v1, 1 }
  0xa4   : > { %1564 = vlog2.f32 (%p603_p3), %v615_v4  ;;  %v650_v8 = vsub.f32 (%p603_p3), %v648_v5, %v649_v6  ;;  %s2912_s23 = sld [smem:[#allocation41_spill]] (%p603_p3)  ;;  %v736_v45 = vadd.s32 (%p603_p3), 8, %v735_v36  ;;  %vm785_vm11 = vcmp.eq.s32.totalorder (%p603_p3), %v2032_v1, 5 }
  0xa5   : > { %s2913_s24 = sld [smem:[#allocation42_spill]] (%p603_p3) }
  0xa6   : > { %v651_v16 = vmul.f32 %v650_v8, %v650_v8  ;;  %s2914_s13 = sld [smem:[#allocation46_spill]] }
  0xa7   : > { %v2049_v7 = vld [vmem:[%s2909_s17] sm:$0xff]  ;;  %v2054_v9 = vld [vmem:[%s2909_s17 + $0x8] sm:$0xff]  ;;  %v2059_v10 = vld [vmem:[%s2909_s17 + $0x10] sm:$0xff] }
  0xa8   : > { %v2064_v11 = vld [vmem:[%s2909_s17 + $0x18] sm:$0xff]  ;;  %v680_v12 = vsel %vm679_vm0, %v2049_v7, -inf  ;;  %v681_v13 = vsel %vm679_vm0, %v2054_v9, -inf  ;;  %v689_v14 = vsel %vm679_vm0, %v2059_v10, -inf  ;;  %v613_v19 = vld [vmem:[%s2910_s3] sm:$0x3] }
  0xa9   : > { %v690_v15 = vsel %vm679_vm0, %v2064_v11, -inf  ;;  %v682_v17 = vmax.f32 %v680_v12, %v681_v13  ;;  %v652_v20 = vmul.f32 %v651_v16, %v613_v19  ;;  %v618_v23 = vld [vmem:[%s2911_s22] sm:$0x3] }
  0xaa   : > { %v691_v18 = vmax.f32 %v689_v14, %v690_v15  ;;  %v1565_v24 = vpop.eup %1564  ;;  %v633_v25 = vld [vmem:[%s2912_s23] sm:$0x3] }
  0xab   : > { %v683_v21 = vrot.slane %v682_v17, 4  ;;  %v634_v26 = vld [vmem:[%s2913_s24] sm:$0x3]  ;;  %v653_v27 = vsel %vm622_vm1, %v652_v20, 0.0  ;;  %v617_v30 = vmul.f32 0.6931472, %v1565_v24 }
  0xac   : > { %v692_v22 = vrot.slane %v691_v18, 4  ;;  %654 = vadd.xlane.f32.xlu1 %v653_v27  ;;  %v2090_v31 = vld [vmem:[%s2914_s13] sm:$0x3]  ;;  %v635_v35 = vsub.f32 %v633_v25, %v634_v26 }
  0xad   : > { %v684_v28 = vmax.f32 %v682_v17, %v683_v21  ;;  %v619_v34 = vsub.f32 %v618_v23, %v617_v30  ;;  %v737_v40 = vrot.slane %v2090_v31, 1  ;;  %v738_v46 = vperm.slane %v2090_v31, 0 }
  0xae   : > { %v693_v29 = vmax.f32 %v691_v18, %v692_v22  ;;  %v636_v44 = vmul.f32 %v635_v35, %v635_v35  ;;  %vm766_vm7 = vcmp.ge.s32.totalorder %v2090_v31, 0 }
  0xaf   : > { %v685_v32 = vrot.slane %v684_v28, 2  ;;  %v620_v39 = vmul.f32 %v619_v34, %v619_v34  ;;  %v739_v50 = vperm.slane %v737_v40, 0  ;;  %vm2107_vm2 = vcmp.eq.s32.totalorder %v735_v36, %v738_v46 }
  0xb0   : > { %v694_v33 = vrot.slane %v693_v29, 2  ;;  %v637_v55 = vmul.f32 %v636_v44, %v613_v19  ;;  %vm2111_vm3 = vcmp.eq.s32.totalorder %v736_v45, %v738_v46  ;;  %v744_v62 = vsel %vm2107_vm2, %v2049_v7, 0.0 }
  0xb1   : > { %v686_v37 = vmax.f32 %v684_v28, %v685_v32  ;;  %v621_v43 = vmul.f32 %v620_v39, %v613_v19  ;;  %vm742_vm4 = vcmp.eq.s32.totalorder %v735_v36, %v739_v50  ;;  %vm743_vm5 = vcmp.eq.s32.totalorder %v736_v45, %v739_v50 }
  0xb2   : > { %v695_v38 = vmax.f32 %v693_v29, %v694_v33  ;;  %v745_v63 = vsel %vm2111_vm3, %v2054_v9, 0.0  ;;  %v638_v0 = vsel %vm622_vm1, %v637_v55, 0.0  ;;  %v746_v2 = vsel %vm742_vm4, %v2059_v10, 0.0 }
  0xb3   : > { %v687_v41 = vrot.slane %v686_v37, 1  ;;  %v623_v49 = vsel %vm622_vm1, %v621_v43, 0.0  ;;  %v747_v3 = vsel %vm743_vm5, %v2064_v11, 0.0  ;;  %v748_v4 = vsel %vm679_vm0, %v744_v62, 0.0 }
  0xb4   : > { %v696_v42 = vrot.slane %v695_v38, 1  ;;  %624 = vadd.xlane.f32.xlu0 %v623_v49  ;;  %v749_v5 = vsel %vm679_vm0, %v745_v63, 0.0  ;;  %v757_v6 = vsel %vm679_vm0, %v746_v2, 0.0 }
  0xb5   : > { %v2094_v47 = vmax.f32 %v686_v37, %v687_v41 }
  0xb6   : > { %v2096_v48 = vmax.f32 %v695_v38, %v696_v42 }
  0xb7   : > { %v698_v51 = vsub.f32 %v2049_v7, %v2094_v47  ;;  %v699_v52 = vsub.f32 %v2054_v9, %v2094_v47  ;;  %v758_v7 = vsel %vm679_vm0, %v747_v3, 0.0  ;;  %v750_v9 = vadd.f32 %v749_v5, %v748_v4 }
  0xb8   : > { %v700_v53 = vsub.f32 %v2059_v10, %v2096_v48  ;;  %v701_v54 = vsub.f32 %v2064_v11, %v2096_v48  ;;  %v759_v15 = vadd.f32 %v758_v7, %v757_v6 }
  0xb9   : > { %v702_v58 = vmul.f32 1.442695, %v698_v51  ;;  %v704_v59 = vmul.f32 1.442695, %v699_v52  ;;  %v751_v19 = vrot.slane %v750_v9, 4 }
  0xba   : > { %v706_v60 = vmul.f32 1.442695, %v700_v53  ;;  %v708_v61 = vmul.f32 1.442695, %v701_v54  ;;  %v760_v22 = vrot.slane %v759_v15, 4 }
  0xbb   : > { %1566 = vpow2.f32 %v702_v58  ;;  %v752_v25 = vadd.f32 %v751_v19, %v750_v9 }
  0xbc   : > { %1568 = vpow2.f32 %v704_v59  ;;  %639 = vadd.xlane.f32.xlu0 %v638_v0  ;;  %v761_v28 = vadd.f32 %v760_v22, %v759_v15 }
  0xbd   : > { %1570 = vpow2.f32 %v706_v60  ;;  %v753_v32 = vrot.slane %v752_v25, 2 }
  0xbe   : > { %1572 = vpow2.f32 %v708_v61  ;;  %v762_v35 = vrot.slane %v761_v28, 2 }
  0xbf   : > { %v754_v38 = vadd.f32 %v753_v32, %v752_v25 }
  0xc0   : > { %v763_v40 = vadd.f32 %v762_v35, %v761_v28 }
  0xc1   : > { %v1567_v8 = vpop.eup %1566  ;;  %v755_v41 = vrot.slane %v754_v38, 1 }
  0xc2   : > { %v1569_v12 = vpop.eup %1568  ;;  %v710_v13 = vsel %vm679_vm0, %v1567_v8, 0.0  ;;  %v764_v42 = vrot.slane %v763_v40, 1 }
  0xc3   : > { %v1571_v14 = vpop.eup %1570  ;;  %v711_v10 = vsel %vm679_vm0, %v1569_v12, 0.0  ;;  %v756_v45 = vadd.f32 %v755_v41, %v754_v38 }
  0xc4   : > { %v1573_v11 = vpop.eup %1572  ;;  %v712_v16 = vadd.f32 %v711_v10, %v710_v13  ;;  %v719_v17 = vsel %vm679_vm0, %v1571_v14, 0.0  ;;  %v765_v51 = vadd.f32 %v764_v42, %v763_v40 }
  0xc5   : > { %v720_v18 = vsel %vm679_vm0, %v1573_v11, 0.0 }
  0xc6   : > { %v713_v20 = vrot.slane %v712_v16, 4  ;;  %v721_v21 = vadd.f32 %v720_v18, %v719_v17 }
  0xc8   : > { %v714_v23 = vadd.f32 %v713_v20, %v712_v16  ;;  %v722_v24 = vrot.slane %v721_v21, 4 }
  0xca   : > { %v715_v26 = vrot.slane %v714_v23, 2  ;;  %v723_v27 = vadd.f32 %v722_v24, %v721_v21 }
  0xcc   : > { %v716_v29 = vadd.f32 %v715_v26, %v714_v23  ;;  %v724_v30 = vrot.slane %v723_v27, 2 }
  0xce   : > { %v717_v33 = vrot.slane %v716_v29, 1  ;;  %v725_v34 = vadd.f32 %v724_v30, %v723_v27  ;;  %v789_v30 = vld [vmem:[#allocation8] sm:$0xff] }
  0xd0   : > { %v718_v36 = vadd.f32 %v717_v33, %v716_v29  ;;  %v726_v37 = vrot.slane %v725_v34, 1 }
  0xd2   : > { %v727_v39 = vadd.f32 %v726_v37, %v725_v34  ;;  %1574 = vlog2.f32 %v718_v36 }
  0xd4   : > { %1576 = vlog2.f32 %v727_v39 }
  0xd8   : > { %v1575_v43 = vpop.eup %1574 }
  0xd9   : > { %v729_v44 = vmul.f32 0.6931472, %v1575_v43 }
  0xda   : > { %v1577_v46 = vpop.eup %1576 }
  0xdb   : > { %v731_v49 = vmul.f32 0.6931472, %v1577_v46  ;;  %v732_v50 = vadd.f32 %v729_v44, %v2094_v47 }
  0xdd   : > { %v733_v52 = vadd.f32 %v731_v49, %v2096_v48  ;;  %v767_v53 = vsub.f32 %v732_v50, %v756_v45 }
  0xdf   : > { %v768_v54 = vsub.f32 %v733_v52, %v765_v51 }
  0xe1   : > { %v772_v55 = vsel %vm771_vm6, %v768_v54, %v767_v53 }
  0xe2   : > { %v774_v56 = vsel %vm766_vm7, %v772_v55, 0.0 }
  0xe3   : > { %v775_v57 = vsel %vm622_vm1, %v774_v56, 0.0 }
  0xe4   : > { %776 = vadd.xlane.f32.xlu1 %v775_v57 }
 0x11f   : > { %v655_v58 = vpop.xlane.xlu1 %654 }
 0x120   : > { %v656_v59 = vrot.slane %v655_v58, 4 }
 0x122   : > { %v657_v62 = vadd.f32 %v656_v59, %v655_v58 }
 0x124   : > { %v658_v0 = vrot.slane %v657_v62, 2 }
 0x126   : > { %v659_v5 = vadd.f32 %v658_v0, %v657_v62 }
 0x127   : > { %v625_v60 = vpop.xlane.xlu0 %624 }
 0x128   : > { %v626_v61 = vrot.slane %v625_v60, 4  ;;  %v660_v8 = vrot.slane %v659_v5, 1 }
 0x12a   : > { %v627_v63 = vadd.f32 %v626_v61, %v625_v60  ;;  %v661_v13 = vadd.f32 %v660_v8, %v659_v5 }
 0x12c   : > { %v628_v47 = vrot.slane %v627_v63, 2 }
 0x12e   : > { %v629_v2 = vadd.f32 %v628_v47, %v627_v63 }
 0x12f   : > { %v640_v48 = vpop.xlane.xlu0 %639 }
 0x130   : > { %v641_v3 = vrot.slane %v640_v48, 4  ;;  %v630_v4 = vrot.slane %v629_v2, 1 }
 0x132   : > { %v642_v31 = vadd.f32 %v641_v3, %v640_v48  ;;  %v631_v6 = vadd.f32 %v630_v4, %v629_v2 }
 0x134   : > { %v643_v7 = vrot.slane %v642_v31, 2  ;;  %1492 = vpush %v631_v6 }
 0x136   : > { %v644_v9 = vadd.f32 %v643_v7, %v642_v31 }
 0x138   : > { %v645_v12 = vrot.slane %v644_v9, 1 }
 0x13a   : > { %v646_v14 = vadd.f32 %v645_v12, %v644_v9 }
 0x13c   : > { %1494 = vpush %v646_v14 }
 0x13d   : > { %1496 = vpush %v661_v13 }
 0x157   : > { %v777_v10 = vpop.xlane.xlu1 %776 }
 0x158   : > { %v778_v15 = vrot.slane %v777_v10, 4 }
 0x15a   : > { %v779_v11 = vadd.f32 %v778_v15, %v777_v10 }
 0x15c   : > { %v780_v16 = vrot.slane %v779_v11, 2 }
 0x15e   : > { %v781_v17 = vadd.f32 %v780_v16, %v779_v11 }
 0x160   : > { %v782_v18 = vrot.slane %v781_v17, 1 }
 0x162   : > { %v783_v19 = vadd.f32 %v782_v18, %v781_v17 }
 0x164   : > { %1498 = vpush %v783_v19 }
 0x165   : > { %s1493_s4 = spop %1492 }
 0x166   : > { %v664_v20 = vstv %s1493_s4 }
 0x167   : > { %v665_v22 = vsel %vm663_vm8, %v664_v20, 0.0 }
 0x16d   : > { %s1495_s25 = spop %1494 }
 0x16e   : > { %v667_v21 = vstv %s1495_s25  ;;  %s1497_s3 = spop %1496 }
 0x16f   : > { %v668_v23 = vsel %vm666_vm9, %v667_v21, 0.0  ;;  %v671_v24 = vstv %s1497_s3 }
 0x170   : > { %v669_v25 = vadd.f32 %v668_v23, %v665_v22  ;;  %v672_v26 = vsel %vm670_vm10, %v671_v24, 0.0 }
 0x172   : > { %v673_v27 = vadd.f32 %v672_v26, %v669_v25 }
 0x195   : > { %s1499_s19 = spop %1498 }
 0x196   : > { %v786_v28 = vstv %s1499_s19 }
 0x197   : > { %v787_v29 = vsel %vm785_vm11, %v786_v28, 0.0 }
 0x198   : > { %v788_v32 = vadd.f32 %v787_v29, %v673_v27 }
 0x19a   : > { %v790_v33 = vadd.f32 %v789_v30, %v788_v32 }
 0x19c   : > { %791 = vst [vmem:[#allocation8] sm:$0xff] %v790_v33 }
 0x19d PF: > { %s2919_s18 = sld [smem:[#allocation40_spill]]  ;;  %v1788_v35 = vmov 0   ;;  %v2144_v36 = vld [vmem:[%s2018_s10] sm:$0xff]  ;;  %v2147_v37 = vld [vmem:[%s2018_s10 + $0x8] sm:$0xff]  ;;  %v2154_v44 = vld [vmem:[%s2018_s10 + $0x10] sm:$0xff]  ;;  %vm1048_vm15 = vcmask 1041408  }
 0x19e   : > { %1578 = vset.pattern.permute.xlu0 %v1788_v35  ;;  %v800_v38 = vld [vmem:[%s2025_s12] sm:$0xff]  ;;  %v801_v39 = vld [vmem:[%s2025_s12 + $0x8] sm:$0xff]  ;;  %v2157_v45 = vld [vmem:[%s2018_s10 + $0x18] sm:$0xff]  ;;  %s2972_s8 = sld [smem:[#allocation47_spill]]  ;;  %p1511_p7 = scmp.eq.s32.totalorder %s1889_s14, 2 }
 0x19f   : > { %v919_v40 = vsub.f32 %v800_v38, %v2144_v36  ;;  %v920_v41 = vsub.f32 %v801_v39, %v2147_v37  ;;  %v802_v46 = vld [vmem:[%s2025_s12 + $0x10] sm:$0xff]  ;;  %v803_v49 = vld [vmem:[%s2025_s12 + $0x18] sm:$0xff]  ;;  %v2168_v56 = vld [vmem:[%s2018_s10 + $0x20] sm:$0xff] }
 0x1a0   : > { %v921_v50 = vsub.f32 %v802_v46, %v2154_v44  ;;  %v922_v51 = vsub.f32 %v803_v49, %v2157_v45  ;;  %v804_v57 = vld [vmem:[%s2025_s12 + $0x20] sm:$0xff]  ;;  %v2184_v47 = vld [vmem:[%s2018_s10 + $0x28] sm:$0xff]  ;;  %v2194_v31 = vld [vmem:[%s2018_s10 + $0x30] sm:$0xff] }
 0x1a1   : > { %v927_v42 = vand.u32 2147483647, %v919_v40  ;;  %v928_v43 = vand.u32 2147483647, %v920_v41  ;;  %v805_v0 = vld [vmem:[%s2025_s12 + $0x28] sm:$0xff]  ;;  %v923_v2 = vsub.f32 %v804_v57, %v2168_v56  ;;  %v2197_v6 = vld [vmem:[%s2018_s10 + $0x38] sm:$0xff] }
 0x1a2   : > { %v929_v52 = vand.u32 2147483647, %v921_v50  ;;  %v930_v53 = vand.u32 2147483647, %v922_v51  ;;  %v924_v48 = vsub.f32 %v805_v0, %v2184_v47  ;;  %v806_v7 = vld [vmem:[%s2025_s12 + $0x30] sm:$0xff]  ;;  %v807_v12 = vld [vmem:[%s2025_s12 + $0x38] sm:$0xff] }
 0x1a3   : > { %v883_v34 = vld [vmem:[%s2919_s18] sm:$0x3]  ;;  %943 = vst [vmem:[#allocation1] ss:$4 sm:$0xff] %v927_v42  ;;  %v931_v3 = vand.u32 2147483647, %v923_v2  ;;  %v925_v16 = vsub.f32 %v806_v7, %v2194_v31  ;;  %v926_v17 = vsub.f32 %v807_v12, %v2197_v6 }
 0x1a4   : > { %885 = vperm.xlu0 %1578, %v883_v34   ;;  %945 = vst [vmem:[#allocation1 + $0x20] ss:$4 sm:$0xff] %v928_v43  ;;  %v932_v13 = vand.u32 2147483647, %v924_v48  ;;  %v808_v22 = vld [vmem:[%s2034_s15] sm:$0xff]  ;;  %v809_v23 = vld [vmem:[%s2034_s15 + $0x8] sm:$0xff] }
 0x1a5   : > { %v933_v18 = vand.u32 2147483647, %v925_v16  ;;  %v934_v19 = vand.u32 2147483647, %v926_v17  ;;  %v1121_v30 = vsub.f32 %v808_v22, %v2144_v36  ;;  %v1122_v32 = vsub.f32 %v809_v23, %v2147_v37  ;;  %v810_v37 = vld [vmem:[%s2034_s15 + $0x10] sm:$0xff]  ;;  %v811_v46 = vld [vmem:[%s2034_s15 + $0x18] sm:$0xff] }
 0x1a6   : > { %v1123_v49 = vsub.f32 %v810_v37, %v2154_v44  ;;  %v1124_v50 = vsub.f32 %v811_v46, %v2157_v45  ;;  %v812_v2 = vld [vmem:[%s2034_s15 + $0x20] sm:$0xff]  ;;  %v813_v44 = vld [vmem:[%s2034_s15 + $0x28] sm:$0xff]  ;;  %v814_v23 = vld [vmem:[%s2034_s15 + $0x30] sm:$0xff]  ;;  %s1483_s10 = sshll.u32 %s1774_s28, 12  ;;  %s1342_s24 = sshll.u32 %s2972_s8, 4  ;;  %s1343_s24 = int_to_ptr.hbm [resolvable:$true] %s1342_s24 }
 0x1a7   : > { %v1129_v33 = vand.u32 2147483647, %v1121_v30  ;;  %v1130_v34 = vand.u32 2147483647, %v1122_v32  ;;  %v1125_v45 = vsub.f32 %v812_v2, %v2168_v56  ;;  %v1126_v16 = vsub.f32 %v813_v44, %v2184_v47  ;;  %v815_v30 = vld [vmem:[%s2034_s15 + $0x38] sm:$0xff]  ;;  %s1789_s15 = smov [#allocation8]  }
 0x1a8   : > { %v1131_v51 = vand.u32 2147483647, %v1123_v49  ;;  %v1127_v47 = vsub.f32 %v814_v23, %v2194_v31  ;;  %v1128_v49 = vsub.f32 %v815_v30, %v2197_v6  ;;  %v819_v31 = vadd.s32 128, %v2032_v1  ;;  %s1340_s16 = sshll.u32 %s1789_s15, 4  ;;  %s1341_s16 = int_to_ptr.vmem [resolvable:$true] %s1340_s16 }
 0x1a9   : > { %v1133_v17 = vand.u32 2147483647, %v1125_v45  ;;  %v2309_v6 = vstv %s1483_s10  ;;  %v820_v23 = vadd.s32 256, %v2032_v1  ;;  %v821_v30 = vadd.s32 384, %v2032_v1 }
 0x1aa   : > { %v2163_v54 = vld.sshfl [vmem:[#allocation1] sm:$0xff pattern:$0x73625140]  ;;  %v2165_v55 = vld.sshfl [vmem:[#allocation1 + $0x8] sm:$0xff pattern:$0x73625140] }
 0x1ab   : > { %v2171_v58 = vld.sshfl [vmem:[#allocation1 + $0x10] sm:$0xff pattern:$0x73625140]  ;;  %v2173_v59 = vld.sshfl [vmem:[#allocation1 + $0x18] sm:$0xff pattern:$0x73625140] }
 0x1ac   : > { %v2175_v60 = vld.sshfl [vmem:[#allocation1 + $0x20] sm:$0xff pattern:$0x73625140]  ;;  %v2177_v61 = vld.sshfl [vmem:[#allocation1 + $0x28] sm:$0xff pattern:$0x73625140] }
 0x1ad   : > { %v2179_v62 = vld.sshfl [vmem:[#allocation1 + $0x30] sm:$0xff pattern:$0x73625140]  ;;  %v2181_v63 = vld.sshfl [vmem:[#allocation1 + $0x38] sm:$0xff pattern:$0x73625140] }
 0x1ae   : > { %954 = vst [vmem:[#allocation1] ss:$4 sm:$0xff] %v929_v52  ;;  %v1132_v52 = vand.u32 2147483647, %v1124_v50  ;;  %v1135_v50 = vand.u32 2147483647, %v1127_v47  ;;  %v2315_v47 = vadd.s32 %v2309_v6, %v2032_v1 }
 0x1af   : > { %955 = vst [vmem:[#allocation1 + $0x20] ss:$4 sm:$0xff] %v930_v53 }
 0x1b5   : > { %v2189_v4 = vld.sshfl [vmem:[#allocation1] sm:$0xff pattern:$0x73625140]  ;;  %v2191_v5 = vld.sshfl [vmem:[#allocation1 + $0x8] sm:$0xff pattern:$0x73625140] }
 0x1b6   : > { %v2200_v8 = vld.sshfl [vmem:[#allocation1 + $0x10] sm:$0xff pattern:$0x73625140]  ;;  %v2202_v9 = vld.sshfl [vmem:[#allocation1 + $0x18] sm:$0xff pattern:$0x73625140] }
 0x1b7   : > { %v2205_v14 = vld.sshfl [vmem:[#allocation1 + $0x20] sm:$0xff pattern:$0x73625140]  ;;  %v2207_v10 = vld.sshfl [vmem:[#allocation1 + $0x28] sm:$0xff pattern:$0x73625140] }
 0x1b8   : > { %2920 = vst [vmem:[#allocation14_spill] sm:$0xff] %v2205_v14  ;;  %v2209_v15 = vld.sshfl [vmem:[#allocation1 + $0x30] sm:$0xff pattern:$0x73625140]  ;;  %v2450_v14 = vadd.s32 3328, %v2032_v1 }
 0x1b9   : > { %2921 = vst [vmem:[#allocation15_spill] sm:$0xff] %v2207_v10  ;;  %v2211_v11 = vld.sshfl [vmem:[#allocation1 + $0x38] sm:$0xff pattern:$0x73625140]  ;;  %v2431_v10 = vadd.s32 2944, %v2032_v1 }
 0x1ba   : > { %2922 = vst [vmem:[#allocation16_spill] sm:$0xff] %v2209_v15  ;;  %v2412_v15 = vadd.s32 2560, %v2032_v1 }
 0x1bb   : > { %964 = vst [vmem:[#allocation1] ss:$4 sm:$0xff] %v931_v3 }
 0x1bc   : > { %2923 = vst [vmem:[#allocation17_spill] sm:$0xff] %v2211_v11  ;;  %v2409_v11 = vadd.s32 2432, %v2032_v1 }
 0x1bd   : > { %965 = vst [vmem:[#allocation1 + $0x20] ss:$4 sm:$0xff] %v932_v13 }
 0x1be   : > { %2943 = vst [vmem:[#allocation37_spill] sm:$0xff] %v2450_v14  ;;  %v2469_v14 = vadd.s32 3712, %v2032_v1 }
 0x1c0   : > { %2945 = vst [vmem:[#allocation39_spill] sm:$0xff] %v2469_v14 }
 0x1c2   : > { %v2215_v20 = vld.sshfl [vmem:[#allocation1] sm:$0xff pattern:$0x73625140]  ;;  %v2217_v21 = vld.sshfl [vmem:[#allocation1 + $0x8] sm:$0xff pattern:$0x73625140] }
 0x1c3   : > { %2924 = vst [vmem:[#allocation18_spill] sm:$0xff] %v2215_v20  ;;  %v2221_v24 = vld.sshfl [vmem:[#allocation1 + $0x10] sm:$0xff pattern:$0x73625140]  ;;  %v2393_v20 = vadd.s32 2176, %v2032_v1 }
 0x1c4   : > { %2925 = vst [vmem:[#allocation19_spill] sm:$0xff] %v2217_v21  ;;  %v2223_v25 = vld.sshfl [vmem:[#allocation1 + $0x18] sm:$0xff pattern:$0x73625140]  ;;  %v834_v21 = vadd.s32 2048, %v2032_v1 }
 0x1c5   : > { %2926 = vst [vmem:[#allocation20_spill] sm:$0xff] %v2221_v24  ;;  %v2225_v26 = vld.sshfl [vmem:[#allocation1 + $0x20] sm:$0xff pattern:$0x73625140]  ;;  %v832_v24 = vadd.s32 1792, %v2032_v1 }
 0x1c6   : > { %2927 = vst [vmem:[#allocation21_spill] sm:$0xff] %v2223_v25  ;;  %v2227_v27 = vld.sshfl [vmem:[#allocation1 + $0x28] sm:$0xff pattern:$0x73625140] }
 0x1c7   : > { %2928 = vst [vmem:[#allocation22_spill] sm:$0xff] %v2225_v26  ;;  %v2229_v28 = vld.sshfl [vmem:[#allocation1 + $0x30] sm:$0xff pattern:$0x73625140] }
 0x1c8   : > { %2929 = vst [vmem:[#allocation23_spill] sm:$0xff] %v2227_v27  ;;  %v2231_v29 = vld.sshfl [vmem:[#allocation1 + $0x38] sm:$0xff pattern:$0x73625140]  ;;  %v829_v27 = vadd.s32 1408, %v2032_v1 }
 0x1c9   : > { %2930 = vst [vmem:[#allocation24_spill] sm:$0xff] %v2229_v28  ;;  %v828_v28 = vadd.s32 1280, %v2032_v1 }
 0x1ca   : > { %2931 = vst [vmem:[#allocation25_spill] sm:$0xff] %v2231_v29 }
 0x1cb   : > { %974 = vst [vmem:[#allocation1] ss:$4 sm:$0xff] %v933_v18  ;;  %v1134_v18 = vand.u32 2147483647, %v1126_v16 }
 0x1cc   : > { %975 = vst [vmem:[#allocation1 + $0x20] ss:$4 sm:$0xff] %v934_v19 }
 0x1d2   : > { %v2235_v35 = vld.sshfl [vmem:[#allocation1] sm:$0xff pattern:$0x73625140]  ;;  %v2237_v38 = vld.sshfl [vmem:[#allocation1 + $0x8] sm:$0xff pattern:$0x73625140] }
 0x1d3   : > { %2932 = vst [vmem:[#allocation26_spill] sm:$0xff] %v2235_v35  ;;  %v2239_v39 = vld.sshfl [vmem:[#allocation1 + $0x10] sm:$0xff pattern:$0x73625140]  ;;  %v827_v35 = vadd.s32 1152, %v2032_v1 }
 0x1d4   : > { %2933 = vst [vmem:[#allocation27_spill] sm:$0xff] %v2237_v38  ;;  %v2241_v40 = vld.sshfl [vmem:[#allocation1 + $0x18] sm:$0xff pattern:$0x73625140] }
 0x1d5   : > { %2934 = vst [vmem:[#allocation28_spill] sm:$0xff] %v2239_v39  ;;  %v2243_v41 = vld.sshfl [vmem:[#allocation1 + $0x20] sm:$0xff pattern:$0x73625140]  ;;  %v825_v39 = vadd.s32 896, %v2032_v1 }
 0x1d6   : > { %2935 = vst [vmem:[#allocation29_spill] sm:$0xff] %v2241_v40  ;;  %v2245_v42 = vld.sshfl [vmem:[#allocation1 + $0x28] sm:$0xff pattern:$0x73625140] }
 0x1d7   : > { %2936 = vst [vmem:[#allocation30_spill] sm:$0xff] %v2243_v41  ;;  %v2247_v43 = vld.sshfl [vmem:[#allocation1 + $0x30] sm:$0xff pattern:$0x73625140]  ;;  %v2328_v41 = vadd.s32 %v2309_v6, %v821_v30  ;;  %v2373_v25 = vadd.s32 %v2309_v6, %v825_v39 }
 0x1d8   : > { %2937 = vst [vmem:[#allocation31_spill] sm:$0xff] %v2245_v42  ;;  %v2249_v36 = vld.sshfl [vmem:[#allocation1 + $0x38] sm:$0xff pattern:$0x73625140]  ;;  %v823_v42 = vadd.s32 640, %v2032_v1 }
 0x1d9   : > { %2938 = vst [vmem:[#allocation32_spill] sm:$0xff] %v2247_v43 }
 0x1da   : > { %2939 = vst [vmem:[#allocation33_spill] sm:$0xff] %v2249_v36  ;;  %v2348_v38 = vadd.s32 %v2309_v6, %v823_v42 }
 0x1db   : > { %1145 = vst [vmem:[#allocation1] ss:$4 sm:$0xff] %v1129_v33 }
 0x1dc   : > { %1147 = vst [vmem:[#allocation1 + $0x20] ss:$4 sm:$0xff] %v1130_v34 }
 0x1e2   : > { %v1148_v53 = vld.sshfl [vmem:[#allocation1] sm:$0xff pattern:$0x73625140]  ;;  %v1149_v57 = vld.sshfl [vmem:[#allocation1 + $0x8] sm:$0xff pattern:$0x73625140] }
 0x1e3   : > { %v2255_v0 = vld.sshfl [vmem:[#allocation1 + $0x10] sm:$0xff pattern:$0x73625140]  ;;  %v2258_v48 = vld.sshfl [vmem:[#allocation1 + $0x18] sm:$0xff pattern:$0x73625140] }
 0x1e4   : > { %v2260_v3 = vld.sshfl [vmem:[#allocation1 + $0x20] sm:$0xff pattern:$0x73625140]  ;;  %v2262_v7 = vld.sshfl [vmem:[#allocation1 + $0x28] sm:$0xff pattern:$0x73625140] }
 0x1e5   : > { %v2264_v12 = vld.sshfl [vmem:[#allocation1 + $0x30] sm:$0xff pattern:$0x73625140]  ;;  %v2267_v13 = vld.sshfl [vmem:[#allocation1 + $0x38] sm:$0xff pattern:$0x73625140] }
 0x1e6   : > { %1156 = vst [vmem:[#allocation1] ss:$4 sm:$0xff] %v1131_v51  ;;  %v1136_v51 = vand.u32 2147483647, %v1128_v49  ;;  %v2318_v49 = vadd.s32 %v2309_v6, %v819_v31  ;;  %v824_v31 = vadd.s32 768, %v2032_v1 }
 0x1e7   : > { %1157 = vst [vmem:[#allocation1 + $0x20] ss:$4 sm:$0xff] %v1132_v52 }
 0x1e8   : > { %v2359_v29 = vadd.s32 %v2309_v6, %v824_v31  ;;  %v830_v31 = vadd.s32 1536, %v2032_v1 }
 0x1ed   : > { %v2271_v19 = vld.sshfl [vmem:[#allocation1] sm:$0xff pattern:$0x73625140]  ;;  %v2273_v22 = vld.sshfl [vmem:[#allocation1 + $0x8] sm:$0xff pattern:$0x73625140] }
 0x1ee   : > { %v2277_v32 = vld.sshfl [vmem:[#allocation1 + $0x10] sm:$0xff pattern:$0x73625140]  ;;  %v2279_v33 = vld.sshfl [vmem:[#allocation1 + $0x18] sm:$0xff pattern:$0x73625140] }
 0x1ef   : > { %v2281_v34 = vld.sshfl [vmem:[#allocation1 + $0x20] sm:$0xff pattern:$0x73625140]  ;;  %v2283_v37 = vld.sshfl [vmem:[#allocation1 + $0x28] sm:$0xff pattern:$0x73625140] }
 0x1f0   : > { %v2285_v46 = vld.sshfl [vmem:[#allocation1 + $0x30] sm:$0xff pattern:$0x73625140]  ;;  %v2287_v56 = vld.sshfl [vmem:[#allocation1 + $0x38] sm:$0xff pattern:$0x73625140] }
 0x1f1   : > { %1166 = vst [vmem:[#allocation1] ss:$4 sm:$0xff] %v1133_v17 }
 0x1f2   : > { %1167 = vst [vmem:[#allocation1 + $0x20] ss:$4 sm:$0xff] %v1134_v18 }
 0x1f8   : > { %v2291_v52 = vld.sshfl [vmem:[#allocation1] sm:$0xff pattern:$0x73625140]  ;;  %v2293_v2 = vld.sshfl [vmem:[#allocation1 + $0x8] sm:$0xff pattern:$0x73625140] }
 0x1f9   : > { %v2295_v44 = vld.sshfl [vmem:[#allocation1 + $0x10] sm:$0xff pattern:$0x73625140]  ;;  %v2297_v45 = vld.sshfl [vmem:[#allocation1 + $0x18] sm:$0xff pattern:$0x73625140] }
 0x1fa   : > { %v2299_v16 = vld.sshfl [vmem:[#allocation1 + $0x20] sm:$0xff pattern:$0x73625140]  ;;  %v2301_v36 = vld.sshfl [vmem:[#allocation1 + $0x28] sm:$0xff pattern:$0x73625140] }
 0x1fb   : > { %v2303_v17 = vld.sshfl [vmem:[#allocation1 + $0x30] sm:$0xff pattern:$0x73625140]  ;;  %v2305_v18 = vld.sshfl [vmem:[#allocation1 + $0x38] sm:$0xff pattern:$0x73625140] }
 0x1fc   : > { %2940 = vst [vmem:[#allocation34_spill] sm:$0xff] %v2303_v17  ;;  %v2447_v17 = vadd.s32 3200, %v2032_v1 }
 0x1fd   : > { %2941 = vst [vmem:[#allocation35_spill] sm:$0xff] %v2305_v18  ;;  %v2428_v18 = vadd.s32 2816, %v2032_v1 }
 0x1fe   : > { %1176 = vst [vmem:[#allocation1] ss:$4 sm:$0xff] %v1135_v50  ;;  %v822_v50 = vadd.s32 512, %v2032_v1 }
 0x1ff   : > { %1177 = vst [vmem:[#allocation1 + $0x20] ss:$4 sm:$0xff] %v1136_v51  ;;  %v2324_v51 = vadd.s32 %v2309_v6, %v820_v23 }
 0x200   : > { %v2336_v40 = vadd.s32 %v2309_v6, %v822_v50  ;;  %v826_v50 = vadd.s32 1024, %v2032_v1  ;;  %2942 = vst [vmem:[#allocation36_spill] sm:$0xff] %v2447_v17  ;;  %v2466_v17 = vadd.s32 3584, %v2032_v1 }
 0x202   : > { %v2386_v39 = vadd.s32 %v2309_v6, %v826_v50  ;;  %v2403_v50 = vadd.s32 %v2309_v6, %v827_v35  ;;  %v2419_v35 = vadd.s32 2688, %v2032_v1  ;;  %2944 = vst [vmem:[#allocation38_spill] sm:$0xff] %v2466_v17 }
 0x216   : > { %v2320_v43 = vpop.permute.xlu0 %885 }
 0x217   : > { %vm887_vm12 = vcmp.lt.s32.totalorder %v2315_v47, %v2320_v43  ;;  %vm888_vm13 = vcmp.lt.s32.totalorder %v2318_v49, %v2320_v43  ;;  %vm889_vm14 = vcmp.lt.s32.totalorder %v2324_v51, %v2320_v43  ;;  %vm890_vm0 = vcmp.lt.s32.totalorder %v2328_v41, %v2320_v43 }
 0x218   : > { %v1218_v23 = vsel %vm887_vm12, %v1148_v53, 0.0  ;;  %v1219_v30 = vsel %vm888_vm13, %v1149_v57, 0.0  ;;  %v1220_v53 = vsel %vm889_vm14, %v2255_v0, 0.0  ;;  %vm891_vm1 = vcmp.lt.s32.totalorder %v2336_v40, %v2320_v43 }
 0x219   : > { %v1250_v42 = vsel %vm1048_vm15, %v1218_v23, 0.0  ;;  %v1251_v57 = vsel %vm1048_vm15, %v1219_v30, 0.0  ;;  %v1221_v26 = vsel %vm890_vm0, %v2258_v48, 0.0  ;;  %vm892_vm2 = vcmp.lt.s32.totalorder %v2348_v38, %v2320_v43 }
 0x21a   : > { %v1252_v0 = vadd.f32 %v1251_v57, %v1250_v42  ;;  %v1253_v23 = vsel %vm1048_vm15, %v1220_v53, 0.0  ;;  %v831_v30 = vadd.s32 1664, %v2032_v1  ;;  %v1222_v48 = vsel %vm891_vm1, %v2260_v3, 0.0 }
 0x21b   : > { %v833_v57 = vadd.s32 1920, %v2032_v1  ;;  %vm893_vm3 = vcmp.lt.s32.totalorder %v2359_v29, %v2320_v43  ;;  %v1255_v53 = vsel %vm1048_vm15, %v1221_v26, 0.0  ;;  %v1223_v3 = vsel %vm892_vm2, %v2262_v7, 0.0 }
 0x21c   : > { %v1254_v42 = vadd.f32 %v1253_v23, %v1252_v0  ;;  %v2400_v23 = vadd.s32 2304, %v2032_v1  ;;  %vm894_vm4 = vcmp.lt.s32.totalorder %v2373_v25, %v2320_v43  ;;  %v1257_v26 = vsel %vm1048_vm15, %v1222_v48, 0.0 }
 0x21d   : > { %v1224_v7 = vsel %vm893_vm3, %v2264_v12, 0.0  ;;  %vm895_vm5 = vcmp.lt.s32.totalorder %v2386_v39, %v2320_v43  ;;  %v1259_v48 = vsel %vm1048_vm15, %v1223_v3, 0.0  ;;  %v1225_v12 = vsel %vm894_vm4, %v2267_v13, 0.0 }
 0x21e   : > { %v1256_v0 = vadd.f32 %v1255_v53, %v1254_v42  ;;  %v2422_v53 = vadd.s32 %v2309_v6, %v828_v28  ;;  %v2438_v28 = vadd.s32 3072, %v2032_v1  ;;  %vm896_vm6 = vcmp.lt.s32.totalorder %v2403_v50, %v2320_v43 }
 0x21f   : > { %v1261_v3 = vsel %vm1048_vm15, %v1224_v7, 0.0  ;;  %v1226_v13 = vsel %vm895_vm5, %v2271_v19, 0.0  ;;  %v1263_v7 = vsel %vm1048_vm15, %v1225_v12, 0.0  ;;  %v1227_v19 = vsel %vm896_vm6, %v2273_v22, 0.0 }
 0x220   : > { %v1258_v42 = vadd.f32 %v1257_v26, %v1256_v0  ;;  %v2441_v26 = vadd.s32 %v2309_v6, %v829_v27  ;;  %v2457_v27 = vadd.s32 3456, %v2032_v1  ;;  %vm897_vm7 = vcmp.lt.s32.totalorder %v2422_v53, %v2320_v43 }
 0x221   : > { %v1265_v12 = vsel %vm1048_vm15, %v1226_v13, 0.0  ;;  %v1228_v14 = vsel %vm897_vm7, %v2277_v32, 0.0  ;;  %v1016_v22 = vsel %vm887_vm12, %v2163_v54, 0.0  ;;  %v2500_v13 = vadd.s32 %v2309_v6, %v832_v24 }
 0x222   : > { %v1260_v0 = vadd.f32 %v1259_v48, %v1258_v42  ;;  %v2460_v48 = vadd.s32 %v2309_v6, %v830_v31  ;;  %v2476_v31 = vadd.s32 3840, %v2032_v1  ;;  %vm898_vm8 = vcmp.lt.s32.totalorder %v2441_v26, %v2320_v43  ;;  %v2946_v26 = vld [vmem:[#allocation14_spill] sm:$0xff] }
 0x223   : > { %v1267_v32 = vsel %vm1048_vm15, %v1227_v19, 0.0  ;;  %v1229_v54 = vsel %vm898_vm8, %v2279_v33, 0.0  ;;  %v1018_v24 = vsel %vm889_vm14, %v2171_v58, 0.0  ;;  %v1269_v47 = vsel %vm1048_vm15, %v1228_v14, 0.0 }
 0x224   : > { %v1262_v42 = vadd.f32 %v1261_v3, %v1260_v0  ;;  %v2479_v3 = vadd.s32 %v2309_v6, %v831_v30  ;;  %v1017_v30 = vsel %vm888_vm13, %v2165_v55, 0.0  ;;  %vm899_vm9 = vcmp.lt.s32.totalorder %v2460_v48, %v2320_v43  ;;  %v2949_v48 = vld [vmem:[#allocation15_spill] sm:$0xff] }
 0x225   : > { %v1049_v49 = vsel %vm1048_vm15, %v1016_v22, 0.0  ;;  %v1230_v33 = vsel %vm899_vm9, %v2281_v34, 0.0  ;;  %v1019_v58 = vsel %vm890_vm0, %v2173_v59, 0.0  ;;  %v2530_v19 = vadd.s32 %v2309_v6, %v834_v21 }
 0x226   : > { %v1264_v0 = vadd.f32 %v1263_v7, %v1262_v42  ;;  %v2497_v42 = vadd.s32 3968, %v2032_v1  ;;  %v2506_v7 = vadd.s32 %v2309_v6, %v833_v57  ;;  %vm900_vm10 = vcmp.lt.s32.totalorder %v2479_v3, %v2320_v43 }
 0x227   : > { %v1050_v57 = vsel %vm1048_vm15, %v1017_v30, 0.0  ;;  %vm901_vm11 = vcmp.lt.s32.totalorder %v2500_v13, %v2320_v43  ;;  %v1271_v14 = vsel %vm1048_vm15, %v1229_v54, 0.0  ;;  %v1231_v34 = vsel %vm900_vm10, %v2283_v37, 0.0  ;;  %v2953_v13 = vld [vmem:[#allocation17_spill] sm:$0xff] }
 0x228   : > { %v1266_v17 = vadd.f32 %v1265_v12, %v1264_v0  ;;  %v1051_v51 = vadd.f32 %v1050_v57, %v1049_v49  ;;  %v1052_v0 = vsel %vm1048_vm15, %v1018_v24, 0.0  ;;  %v1020_v59 = vsel %vm891_vm1, %v2175_v60, 0.0 }
 0x229   : > { %v2546_v41 = vadd.s32 %v2309_v6, %v2393_v20  ;;  %vm902_vm12 = vcmp.lt.s32.totalorder %v2506_v7, %v2320_v43  ;;  %v1273_v22 = vsel %vm1048_vm15, %v1230_v33, 0.0  ;;  %v1054_v30 = vsel %vm1048_vm15, %v1019_v58, 0.0  ;;  %v2955_v7 = vld [vmem:[#allocation18_spill] sm:$0xff] }
 0x22a   : > { %v1268_v55 = vadd.f32 %v1267_v32, %v1266_v17  ;;  %v1053_v21 = vadd.f32 %v1052_v0, %v1051_v51  ;;  %v1232_v37 = vsel %vm901_vm11, %v2285_v46, 0.0  ;;  %v1021_v60 = vsel %vm892_vm2, %v2177_v61, 0.0 }
 0x22b   : > { %v2562_v40 = vadd.s32 %v2309_v6, %v2400_v23  ;;  %vm903_vm13 = vcmp.lt.s32.totalorder %v2530_v19, %v2320_v43  ;;  %v1275_v54 = vsel %vm1048_vm15, %v1231_v34, 0.0  ;;  %v1233_v46 = vsel %vm902_vm12, %v2287_v56, 0.0  ;;  %v2957_v19 = vld [vmem:[#allocation19_spill] sm:$0xff] }
 0x22c   : > { %v1270_v17 = vadd.f32 %v1269_v47, %v1268_v55  ;;  %v1055_v20 = vadd.f32 %v1054_v30, %v1053_v21  ;;  %v1056_v55 = vsel %vm1048_vm15, %v1020_v59, 0.0  ;;  %v1022_v61 = vsel %vm893_vm3, %v2179_v62, 0.0 }
 0x22d   : > { %v2578_v23 = vadd.s32 %v2309_v6, %v2409_v11  ;;  %vm904_vm14 = vcmp.lt.s32.totalorder %v2546_v41, %v2320_v43  ;;  %v1277_v47 = vsel %vm1048_vm15, %v1232_v37, 0.0  ;;  %v1058_v49 = vsel %vm1048_vm15, %v1021_v60, 0.0  ;;  %v2958_v41 = vld [vmem:[#allocation20_spill] sm:$0xff] }
 0x22e   : > { %v1272_v12 = vadd.f32 %v1271_v14, %v1270_v17  ;;  %v1057_v38 = vadd.f32 %v1056_v55, %v1055_v20  ;;  %v1234_v56 = vsel %vm903_vm13, %v2291_v52, 0.0  ;;  %v1023_v62 = vsel %vm894_vm4, %v2181_v63, 0.0  ;;  %v2947_v20 = vld [vmem:[#allocation36_spill] sm:$0xff] }
 0x22f   : > { %v2594_v29 = vadd.s32 %v2309_v6, %v2412_v15  ;;  %vm905_vm0 = vcmp.lt.s32.totalorder %v2562_v40, %v2320_v43  ;;  %v1279_v33 = vsel %vm1048_vm15, %v1233_v46, 0.0  ;;  %v1060_v17 = vsel %vm1048_vm15, %v1022_v61, 0.0 }
 0x230   : > { %v1274_v32 = vadd.f32 %v1273_v22, %v1272_v12  ;;  %v1059_v11 = vadd.f32 %v1058_v49, %v1057_v38  ;;  %v1235_v52 = vsel %vm904_vm14, %v2293_v2, 0.0  ;;  %v1024_v63 = vsel %vm895_vm5, %v2189_v4, 0.0  ;;  %v2950_v49 = vld [vmem:[#allocation37_spill] sm:$0xff] }
 0x231   : > { %v2610_v25 = vadd.s32 %v2309_v6, %v2419_v35  ;;  %vm906_vm1 = vcmp.lt.s32.totalorder %v2578_v23, %v2320_v43  ;;  %v1281_v51 = vsel %vm1048_vm15, %v1234_v56, 0.0  ;;  %v1062_v14 = vsel %vm1048_vm15, %v1023_v62, 0.0 }
 0x232   : > { %v1276_v24 = vadd.f32 %v1275_v54, %v1274_v32  ;;  %v1061_v15 = vadd.f32 %v1060_v17, %v1059_v11  ;;  %v1236_v2 = vsel %vm905_vm0, %v2295_v44, 0.0  ;;  %v1025_v4 = vsel %vm896_vm6, %v2191_v5, 0.0 }
 0x233   : > { %v2626_v35 = vadd.s32 %v2309_v6, %v2428_v18  ;;  %vm907_vm2 = vcmp.lt.s32.totalorder %v2594_v29, %v2320_v43  ;;  %v1283_v34 = vsel %vm1048_vm15, %v1235_v52, 0.0  ;;  %v1064_v12 = vsel %vm1048_vm15, %v1024_v63, 0.0  ;;  %v2952_v52 = vld [vmem:[#allocation16_spill] sm:$0xff] }
 0x234   : > { %v1278_v57 = vadd.f32 %v1277_v47, %v1276_v24  ;;  %v1063_v39 = vadd.f32 %v1062_v14, %v1061_v15  ;;  %v1237_v44 = vsel %vm906_vm1, %v2297_v45, 0.0  ;;  %v1026_v5 = vsel %vm897_vm7, %v2200_v8, 0.0  ;;  %v2948_v24 = vld [vmem:[#allocation34_spill] sm:$0xff] }
 0x235   : > { %v2642_v50 = vadd.s32 %v2309_v6, %v2431_v10  ;;  %vm908_vm3 = vcmp.lt.s32.totalorder %v2610_v25, %v2320_v43  ;;  %v1285_v21 = vsel %vm1048_vm15, %v1236_v2, 0.0  ;;  %v1066_v22 = vsel %vm1048_vm15, %v1025_v4, 0.0 }
 0x236   : > { %v1280_v58 = vadd.f32 %v1279_v33, %v1278_v57  ;;  %v1065_v18 = vadd.f32 %v1064_v12, %v1063_v39  ;;  %v1238_v45 = vsel %vm907_vm2, %v2299_v16, 0.0  ;;  %v1027_v8 = vsel %vm898_vm8, %v2202_v9, 0.0  ;;  %v1178_v57 = vld.sshfl [vmem:[#allocation1] sm:$0xff pattern:$0x73625140]  ;;  %v2951_v33 = vld [vmem:[#allocation35_spill] sm:$0xff] }
 0x237   : > { %v2658_v53 = vadd.s32 %v2309_v6, %v2438_v28  ;;  %vm909_vm4 = vcmp.lt.s32.totalorder %v2626_v35, %v2320_v43  ;;  %v1287_v37 = vsel %vm1048_vm15, %v1237_v44, 0.0  ;;  %v1068_v32 = vsel %vm1048_vm15, %v1026_v5, 0.0  ;;  %v1180_v44 = vld.sshfl [vmem:[#allocation1 + $0x10] sm:$0xff pattern:$0x73625140] }
 0x238   : > { %v1282_v0 = vadd.f32 %v1281_v51, %v1280_v58  ;;  %v1067_v10 = vadd.f32 %v1066_v22, %v1065_v18  ;;  %v1239_v16 = vsel %vm908_vm3, %v2301_v36, 0.0  ;;  %v1028_v9 = vsel %vm899_vm9, %v2946_v26, 0.0  ;;  %v1179_v51 = vld.sshfl [vmem:[#allocation1 + $0x8] sm:$0xff pattern:$0x73625140] }
 0x239   : > { %v2674_v54 = vadd.s32 %v2309_v6, %v2947_v20  ;;  %vm910_vm5 = vcmp.lt.s32.totalorder %v2642_v50, %v2320_v43  ;;  %v1289_v55 = vsel %vm1048_vm15, %v1238_v45, 0.0  ;;  %v1070_v46 = vsel %vm1048_vm15, %v1027_v8, 0.0  ;;  %v1182_v20 = vld.sshfl [vmem:[#allocation1 + $0x20] sm:$0xff pattern:$0x73625140] }
 0x23a   : > { %v1284_v59 = vadd.f32 %v1283_v34, %v1282_v0  ;;  %v1069_v28 = vadd.f32 %v1068_v32, %v1067_v10  ;;  %v1240_v36 = vsel %vm909_vm4, %v2948_v24, 0.0  ;;  %v1029_v38 = vsel %vm900_vm10, %v2949_v48, 0.0  ;;  %v2954_v34 = vld [vmem:[#allocation38_spill] sm:$0xff]  ;;  %v1181_v10 = vld.sshfl [vmem:[#allocation1 + $0x18] sm:$0xff pattern:$0x73625140] }
 0x23b   : > { %v2690_v56 = vadd.s32 %v2309_v6, %v2950_v49  ;;  %vm911_vm6 = vcmp.lt.s32.totalorder %v2658_v53, %v2320_v43  ;;  %v1291_v62 = vsel %vm1048_vm15, %v1239_v16, 0.0  ;;  %v1072_v11 = vsel %vm1048_vm15, %v1028_v9, 0.0 }
 0x23c   : > { %v1286_v30 = vadd.f32 %v1285_v21, %v1284_v59  ;;  %v1071_v47 = vadd.f32 %v1070_v46, %v1069_v28  ;;  %v1241_v17 = vsel %vm910_vm5, %v2951_v33, 0.0  ;;  %v1030_v58 = vsel %vm901_vm11, %v2952_v52, 0.0 }
 0x23d   : > { %v2706_v15 = vadd.s32 %v2309_v6, %v2457_v27  ;;  %vm912_vm7 = vcmp.lt.s32.totalorder %v2674_v54, %v2320_v43  ;;  %v1293_v14 = vsel %vm1048_vm15, %v1240_v36, 0.0  ;;  %v1074_v2 = vsel %vm1048_vm15, %v1029_v38, 0.0  ;;  %v1183_v38 = vld.sshfl [vmem:[#allocation1 + $0x28] sm:$0xff pattern:$0x73625140] }
 0x23e   : > { %v1288_v60 = vadd.f32 %v1287_v37, %v1286_v30  ;;  %v1073_v63 = vadd.f32 %v1072_v11, %v1071_v47  ;;  %v1242_v0 = vsel %vm911_vm6, %v1178_v57, 0.0  ;;  %v1031_v39 = vsel %vm902_vm12, %v2953_v13, 0.0  ;;  %v2956_v30 = vld [vmem:[#allocation39_spill] sm:$0xff]  ;;  %v2959_v11 = vld [vmem:[#allocation21_spill] sm:$0xff] }
 0x23f   : > { %v2721_v12 = vadd.s32 %v2309_v6, %v2954_v34  ;;  %vm913_vm8 = vcmp.lt.s32.totalorder %v2690_v56, %v2320_v43  ;;  %v1295_v59 = vsel %vm1048_vm15, %v1241_v17, 0.0  ;;  %v1076_v5 = vsel %vm1048_vm15, %v1030_v58, 0.0  ;;  %v2960_v58 = vld [vmem:[#allocation22_spill] sm:$0xff]  ;;  %v2961_v13 = vld [vmem:[#allocation23_spill] sm:$0xff] }
 0x240   : > { %v1290_v61 = vadd.f32 %v1289_v55, %v1288_v60  ;;  %v1075_v27 = vadd.f32 %v1074_v2, %v1073_v63  ;;  %v1243_v18 = vsel %vm912_vm7, %v1179_v51, 0.0  ;;  %v1032_v22 = vsel %vm903_vm13, %v2955_v7, 0.0  ;;  %v1185_v51 = vld.sshfl [vmem:[#allocation1 + $0x38] sm:$0xff pattern:$0x73625140] }
 0x241   : > { %v2736_v8 = vadd.s32 %v2309_v6, %v2956_v30  ;;  %vm914_vm9 = vcmp.lt.s32.totalorder %v2706_v15, %v2320_v43  ;;  %v1297_v37 = vsel %vm1048_vm15, %v1242_v0, 0.0  ;;  %v1078_v32 = vsel %vm1048_vm15, %v1031_v39, 0.0 }
 0x242   : > { %v1292_v3 = vadd.f32 %v1291_v62, %v1290_v61  ;;  %v1077_v45 = vadd.f32 %v1076_v5, %v1075_v27  ;;  %v1244_v16 = vsel %vm913_vm8, %v1180_v44, 0.0  ;;  %v1033_v26 = vsel %vm904_vm14, %v2957_v19, 0.0  ;;  %v2962_v5 = vld [vmem:[#allocation24_spill] sm:$0xff] }
 0x243   : > { %v2751_v28 = vadd.s32 %v2309_v6, %v2476_v31  ;;  %vm915_vm10 = vcmp.lt.s32.totalorder %v2721_v12, %v2320_v43  ;;  %v1299_v55 = vsel %vm1048_vm15, %v1243_v18, 0.0  ;;  %v1080_v46 = vsel %vm1048_vm15, %v1032_v22, 0.0 }
 0x244   : > { %v1294_v4 = vadd.f32 %v1293_v14, %v1292_v3  ;;  %v1079_v9 = vadd.f32 %v1078_v32, %v1077_v45  ;;  %v1245_v24 = vsel %vm914_vm9, %v1181_v10, 0.0  ;;  %v1034_v61 = vsel %vm905_vm0, %v2958_v41, 0.0  ;;  %v2963_v45 = vld [vmem:[#allocation25_spill] sm:$0xff] }
 0x245   : > { %v882_v48 = vadd.s32 %v2309_v6, %v2497_v42  ;;  %vm916_vm11 = vcmp.lt.s32.totalorder %v2736_v8, %v2320_v43  ;;  %v1301_v47 = vsel %vm1048_vm15, %v1244_v16, 0.0  ;;  %v1082_v49 = vsel %vm1048_vm15, %v1033_v26, 0.0  ;;  %v1184_v6 = vld.sshfl [vmem:[#allocation1 + $0x30] sm:$0xff pattern:$0x73625140]  ;;  %v2967_v41 = vld [vmem:[#allocation29_spill] sm:$0xff] }
 0x246   : > { %v1296_v21 = vadd.f32 %v1295_v59, %v1294_v4  ;;  %v1081_v31 = vadd.f32 %v1080_v46, %v1079_v9  ;;  %v1246_v57 = vsel %vm915_vm10, %v1182_v20, 0.0  ;;  %v1035_v40 = vsel %vm906_vm1, %v2959_v11, 0.0  ;;  %v2965_v9 = vld [vmem:[#allocation27_spill] sm:$0xff]  ;;  %v2966_v46 = vld [vmem:[#allocation28_spill] sm:$0xff] }
 0x247   : > { %vm917_vm12 = vcmp.lt.s32.totalorder %v2751_v28, %v2320_v43  ;;  %v1303_v42 = vsel %vm1048_vm15, %v1245_v24, 0.0  ;;  %v1084_v17 = vsel %vm1048_vm15, %v1034_v61, 0.0  ;;  %v1247_v3 = vsel %vm916_vm11, %v1183_v38, 0.0  ;;  %v2968_v38 = vld [vmem:[#allocation30_spill] sm:$0xff] }
 0x248   : > { %v1298_v60 = vadd.f32 %v1297_v37, %v1296_v21  ;;  %v1083_v33 = vadd.f32 %v1082_v49, %v1081_v31  ;;  %v1036_v23 = vsel %vm907_vm2, %v2960_v58, 0.0  ;;  %vm918_vm13 = vcmp.lt.s32.totalorder %v882_v48, %v2320_v43 }
 0x249   : > { %v1305_v14 = vsel %vm1048_vm15, %v1246_v57, 0.0  ;;  %v1086_v2 = vsel %vm1048_vm15, %v1035_v40, 0.0  ;;  %v1248_v0 = vsel %vm917_vm12, %v1184_v6, 0.0  ;;  %v1037_v39 = vsel %vm908_vm3, %v2961_v13, 0.0  ;;  %v2969_v57 = vld [vmem:[#allocation31_spill] sm:$0xff]  ;;  %v2970_v40 = vld [vmem:[#allocation32_spill] sm:$0xff] }
 0x24a   : > { %v1300_v36 = vadd.f32 %v1299_v55, %v1298_v60  ;;  %v1085_v63 = vadd.f32 %v1084_v17, %v1083_v33  ;;  %v1307_v27 = vsel %vm1048_vm15, %v1247_v3, 0.0  ;;  %v1088_v34 = vsel %vm1048_vm15, %v1036_v23, 0.0  ;;  %v2964_v60 = vld [vmem:[#allocation26_spill] sm:$0xff] }
 0x24b   : > { %v1249_v44 = vsel %vm918_vm13, %v1185_v51, 0.0  ;;  %v1038_v18 = vsel %vm909_vm4, %v2962_v5, 0.0  ;;  %v1309_v7 = vsel %vm1048_vm15, %v1248_v0, 0.0  ;;  %v1090_v25 = vsel %vm1048_vm15, %v1037_v39, 0.0 }
 0x24c   : > { %v1302_v62 = vadd.f32 %v1301_v47, %v1300_v36  ;;  %v1087_v29 = vadd.f32 %v1086_v2, %v1085_v63  ;;  %v1039_v30 = vsel %vm910_vm5, %v2963_v45, 0.0  ;;  %v1311_v37 = vsel %vm1048_vm15, %v1249_v44, 0.0 }
 0x24d   : > { %v1092_v32 = vsel %vm1048_vm15, %v1038_v18, 0.0  ;;  %v1040_v35 = vsel %vm911_vm6, %v2964_v60, 0.0  ;;  %v1094_v26 = vsel %vm1048_vm15, %v1039_v30, 0.0  ;;  %v1041_v50 = vsel %vm912_vm7, %v2965_v9, 0.0  ;;  %v1322_v18 = vld [vmem:[#allocation8] sm:$0xff] }
 0x24e   : > { %v1304_v52 = vadd.f32 %v1303_v42, %v1302_v62  ;;  %v1089_v21 = vadd.f32 %v1088_v34, %v1087_v29  ;;  %v1096_v55 = vsel %vm1048_vm15, %v1040_v35, 0.0  ;;  %v1042_v24 = vsel %vm913_vm8, %v2966_v46, 0.0  ;;  %v2971_v42 = vld [vmem:[#allocation33_spill] sm:$0xff] }
 0x24f   : > { %v1098_v53 = vsel %vm1048_vm15, %v1041_v50, 0.0  ;;  %v1043_v61 = vsel %vm914_vm9, %v2967_v41, 0.0  ;;  %v1100_v54 = vsel %vm1048_vm15, %v1042_v24, 0.0  ;;  %v1044_v47 = vsel %vm915_vm10, %v2968_v38, 0.0 }
 0x250   : > { %v1306_v4 = vadd.f32 %v1305_v14, %v1304_v52  ;;  %v1091_v10 = vadd.f32 %v1090_v25, %v1089_v21  ;;  %v1102_v56 = vsel %vm1048_vm15, %v1043_v61, 0.0  ;;  %v1045_v62 = vsel %vm916_vm11, %v2969_v57, 0.0 }
 0x251   : > { %v1104_v15 = vsel %vm1048_vm15, %v1044_v47, 0.0  ;;  %v1046_v33 = vsel %vm917_vm12, %v2970_v40, 0.0  ;;  %v1106_v12 = vsel %vm1048_vm15, %v1045_v62, 0.0  ;;  %v1047_v17 = vsel %vm918_vm13, %v2971_v42, 0.0 }
 0x252   : > { %v1308_v59 = vadd.f32 %v1307_v27, %v1306_v4  ;;  %v1093_v19 = vadd.f32 %v1092_v32, %v1091_v10  ;;  %v1108_v52 = vsel %vm1048_vm15, %v1046_v33, 0.0  ;;  %v1110_v58 = vsel %vm1048_vm15, %v1047_v17, 0.0 }
 0x253   : > { %vm1323_vm15 = vcmp.eq.s32.totalorder %v2032_v1, 3  ;;  %vm1326_vm14 = vcmp.eq.s32.totalorder %v2032_v1, 4 }
 0x254   : > { %v1310_v22 = vadd.f32 %v1309_v7, %v1308_v59  ;;  %v1095_v20 = vadd.f32 %v1094_v26, %v1093_v19 }
 0x256   : > { %v1312_v16 = vadd.f32 %v1311_v37, %v1310_v22  ;;  %v1097_v36 = vadd.f32 %v1096_v55, %v1095_v20 }
 0x258   : > { %1313 = vadd.xlane.f32.xlu1 %v1312_v16  ;;  %v1099_v31 = vadd.f32 %v1098_v53, %v1097_v36 }
 0x25a   : > { %v1101_v49 = vadd.f32 %v1100_v54, %v1099_v31 }
 0x25c   : > { %v1103_v11 = vadd.f32 %v1102_v56, %v1101_v49 }
 0x25e   : > { %v1105_v6 = vadd.f32 %v1104_v15, %v1103_v11 }
 0x260   : > { %v1107_v3 = vadd.f32 %v1106_v12, %v1105_v6 }
 0x262   : > { %v1109_v8 = vadd.f32 %v1108_v52, %v1107_v3 }
 0x264   : > { %v1111_v23 = vadd.f32 %v1110_v58, %v1109_v8 }
 0x266   : > { %1112 = vadd.xlane.f32.xlu0 %v1111_v23 }
 0x2cb   : > { %v1314_v63 = vpop.xlane.xlu1 %1313 }
 0x2cc   : > { %v1315_v51 = vrot.slane %v1314_v63, 4 }
 0x2ce   : > { %v1316_v14 = vadd.f32 %v1315_v51, %v1314_v63 }
 0x2d0   : > { %v1317_v28 = vrot.slane %v1316_v14, 2 }
 0x2d2   : > { %v1318_v4 = vadd.f32 %v1317_v28, %v1316_v14 }
 0x2d4   : > { %v1319_v29 = vrot.slane %v1318_v4, 1 }
 0x2d6   : > { %v1320_v27 = vadd.f32 %v1319_v29, %v1318_v4 }
 0x2d9   : > { %v1113_v2 = vpop.xlane.xlu0 %1112 }
 0x2da   : > { %v1114_v0 = vrot.slane %v1113_v2, 4 }
 0x2dc   : > { %v1115_v13 = vadd.f32 %v1114_v0, %v1113_v2 }
 0x2de   : > { %v1116_v39 = vrot.slane %v1115_v13, 2 }
 0x2e0   : > { %v1117_v43 = vadd.f32 %v1116_v39, %v1115_v13 }
 0x2e2   : > { %v1118_v48 = vrot.slane %v1117_v43, 1 }
 0x2e4   : > { %v1119_v34 = vadd.f32 %v1118_v48, %v1117_v43 }
 0x2e6   : > { %1500 = vpush %v1119_v34 }
 0x2e7   : > { %1502 = vpush %v1320_v27 }
 0x317   : > { %s1501_s28 = spop %1500 }
 0x318   : > { %v1324_v44 = vstv %s1501_s28  ;;  %s1503_s12 = spop %1502 }
 0x319   : > { %v1325_v59 = vsel %vm1323_vm15, %v1324_v44, 0.0  ;;  %v1327_v5 = vstv %s1503_s12 }
 0x31a   : > { %v1328_v21 = vsel %vm1326_vm14, %v1327_v5, 0.0 }
 0x31b   : > { %v1329_v7 = vadd.f32 %v1328_v21, %v1325_v59 }
 0x31d   : > { %v1330_v25 = vadd.f32 %v1329_v7, %v1322_v18 }
 0x31f   : > { %1331 = vst [vmem:[#allocation8] sm:$0xff] %v1330_v25 }
 0x320   : > { %1508 = dma.vmem_to_hbm [thread:$0]  (%p1511_p7), %s1341_s16, 128, %s1343_s24, [#allocation4]  }
 0x321   : > { %1757 = dma.done.wait (%p1511_p7), [#allocation4], 128  }
 0x322   : > { %1759 = vsyncadd (%p1511_p7), [#allocation4], 4294967168 }
 0x323 PF: > { %s30_s30 = sadd.s32 1, %s1782_s30   ;;  %s2973_s21 = sld [smem:[#allocation13_spill]] }
 0x324   : > { %p27_p12 = scmp.ge.s32.totalorder %s30_s30, 5   ;;  %s2974_s5 = sld [smem:[#allocation12_spill]] }
 0x325   : > { %s2975_s25 = smov %s1766_s26  ;;  %s2976_s26 = smov %s1770_s27 }
 0x326   : > { %s2978_s28 = smov %s1778_s29  ;;  %29 = sbr.rel (!%p27_p12) target bundleno = 16 (0x10), region = 144 }
 0x329   : > { %s2977_s27 = smov %s2973_s21 }
 0x32a   : > { %s2979_s29 = smov %s2974_s5 }
 0x32b   :  { %1356 = vsyncpa [#allocation3], 1 }
 0x32c   :  { %1358 = vsyncpa [#allocation3 + $0x1], 1 }
 0x32d   :  { %1359 = vsyncpa [#allocation6], 1 }
 0x32e   :  { %1361 = vsyncpa [#allocation6 + $0x1], 1 }
 0x32f   :  { %1362 = vsyncpa [#allocation4], 1 }
 0x330   :  { %1364 = vsyncpa [#allocation4 + $0x1], 1 }

</bundles_post_ra>
